<compile_context>
chip_gen: v6e
topology: v6e:2x2x1
jax: 0.10.0
libtpu: 0.0.40
codegen_flags: <defaults>
</compile_context>

<pallas_src>
import functools

import jax
import jax.numpy as jnp
from jax import lax
from jax.experimental import pallas as pl
from jax.experimental.pallas import tpu as pltpu

_VMEM_LIMIT = 64 * 1024 * 1024  # safe on v5e/v6e (128 MiB) and v7x (64 MiB)


def _round_up(x, m):
    return (x + m - 1) // m * m


def _resident_spec(block_shape, index_map):
    """BlockSpec for a block whose index never changes.

    Single-buffer it (halves its VMEM footprint — important for large D on
    v7x's 64 MiB VMEM).  Falls back to a plain BlockSpec if the installed JAX
    does not accept pipeline_mode.
    """
    try:
        return pl.BlockSpec(block_shape, index_map, pipeline_mode=pl.Buffered(1))
    except Exception:  # pragma: no cover - older JAX without pipeline_mode
        return pl.BlockSpec(block_shape, index_map)


# ---------------------------------------------------------------------------
# Kernel 1: fused Q/K/V projection, head-major output.
#   grid = (B, T_tiles); one (tt, D) @ (D, 3D) MXU matmul per step; the three
#   outputs are written as (B, H, T, dh) bf16 (what the attention kernel wants)
#   and q is pre-scaled by d_head**-0.5.
# ---------------------------------------------------------------------------
def _qkv_proj_kernel(x_ref, w_ref, q_ref, k_ref, v_ref, *,
                     num_heads, d_head, q_scale):
    x = x_ref[0]                                                      # (tt, D)
    y = jnp.dot(x, w_ref[...], preferred_element_type=jnp.float32)   # (tt, 3D)
    d_model = num_heads * d_head
    for h in range(num_heads):                     # per-head split only here —
        lo = h * d_head                            # amortized, not per KV step
        q_ref[0, h] = (y[:, lo:lo + d_head] * q_scale).astype(q_ref.dtype)
        k_ref[0, h] = y[:, d_model + lo:d_model + lo + d_head].astype(k_ref.dtype)
        v_ref[0, h] = y[:, 2 * d_model + lo:2 * d_model + lo + d_head].astype(v_ref.dtype)


def qkv_projection(x_bf16, wqkv_bf16, *, num_heads, d_head, tile):
    B, T, D = x_bf16.shape
    kernel = functools.partial(_qkv_proj_kernel, num_heads=num_heads,
                               d_head=d_head, q_scale=float(d_head) ** -0.5)
    out = jax.ShapeDtypeStruct((B, num_heads, T, d_head), jnp.bfloat16)
    flops = 2 * B * T * D * 3 * D
    bytes_accessed = 2 * B * T * D + 2 * 3 * D * D + 2 * 3 * B * T * D
    head_spec = pl.BlockSpec((1, num_heads, tile, d_head), lambda b, t: (b, 0, t, 0))
    return pl.pallas_call(
        kernel,
        out_shape=(out, out, out),
        grid_spec=pltpu.PrefetchScalarGridSpec(
            num_scalar_prefetch=0,
            grid=(B, T // tile),
            in_specs=[
                pl.BlockSpec((1, tile, D), lambda b, t: (b, t, 0)),
                _resident_spec((D, 3 * D), lambda b, t: (0, 0)),
            ],
            out_specs=(head_spec, head_spec, head_spec),
        ),
        compiler_params=pltpu.CompilerParams(
            dimension_semantics=("parallel", "parallel"),
            vmem_limit_bytes=_VMEM_LIMIT),
        cost_estimate=pl.CostEstimate(flops=int(flops), transcendentals=0,
                                      bytes_accessed=int(bytes_accessed)),
    )(x_bf16, wqkv_bf16)


# ---------------------------------------------------------------------------
# Kernel 2: causal flash attention (online softmax), all heads batched in one
# dot_general, output projection (+bias) fused into the finalize step.
#   grid = (B, n_pairs) where n_pairs enumerates only the lower-triangular
#   (qi, ki) tile pairs (scalar-prefetch lookup tables drive the index maps),
#   so there are no dead grid steps and no wasted DMA.
# ---------------------------------------------------------------------------
def _flash_mha_kernel(qi_ref, ki_ref, q_ref, k_ref, v_ref, wp_ref, b_ref,
                      o_ref, m_s, l_s, acc_s, *, num_heads, d_head, approx_recip):
    p_idx = pl.program_id(1)
    qi = qi_ref[p_idx]
    ki = ki_ref[p_idx]

    @pl.when(ki == 0)                       # first KV tile of this q tile
    def _init():
        m_s[...] = jnp.full(m_s.shape, -jnp.inf, m_s.dtype)
        l_s[...] = jnp.zeros(l_s.shape, l_s.dtype)
        acc_s[...] = jnp.zeros(acc_s.shape, acc_s.dtype)

    def _step(masked):
        q = q_ref[0]                        # (H, tq, dh) bf16, pre-scaled
        k = k_ref[0]                        # (H, tk, dh) bf16
        v = v_ref[0]                        # (H, tk, dh) bf16
        # All heads in a single batched MXU matmul (batch dim = heads).
        s = jnp.einsum('hqd,hkd->hqk', q, k,
                       preferred_element_type=jnp.float32)           # (H,tq,tk)
        if masked:                          # diagonal tile only (tq == tk)
            tq, tk = s.shape[1], s.shape[2]
            r = lax.broadcasted_iota(jnp.int32, (tq, tk), 0)
            c = lax.broadcasted_iota(jnp.int32, (tq, tk), 1)
            s = jnp.where((r >= c)[None], s, -jnp.inf)
        # Online softmax stats for ALL heads updated with whole-array ops.
        m_prev = m_s[...]                                            # (H,tq,1)
        l_prev = l_s[...]
        m_cur = jnp.max(s, axis=-1, keepdims=True)
        m_next = jnp.maximum(m_prev, m_cur)
        alpha = jnp.exp(m_prev - m_next)
        # NOTE: f32 exp kept for v5e compatibility; on v6e/v7x a bf16 exp is a
        # further EUP-throughput option if transcendentals become the bottleneck.
        p = jnp.exp(s - m_next)
        l_s[...] = alpha * l_prev + jnp.sum(p, axis=-1, keepdims=True)
        m_s[...] = m_next
        pv = jnp.einsum('hqk,hkd->hqd', p.astype(v.dtype), v,
                        preferred_element_type=jnp.float32)          # (H,tq,dh)
        acc_s[...] = acc_s[...] * alpha + pv

    @pl.when(ki < qi)                       # interior tile: no masking work
    def _interior():
        _step(masked=False)

    @pl.when(ki == qi)                      # diagonal tile: mask + finalize
    def _diag_and_finalize():
        _step(masked=True)
        l_fin = l_s[...]                                             # (H,tq,1)
        if approx_recip:
            inv = pl.reciprocal(l_fin, approx=True)
        else:
            inv = 1.0 / l_fin
        o = (acc_s[...] * inv).astype(jnp.bfloat16)                  # (H,tq,dh)
        tq = o.shape[1]
        d_model = num_heads * d_head
        # Fused output projection: sum_h o_h @ Wp_h  (once per q tile).
        y = jnp.zeros((tq, d_model), jnp.float32)
        for h in range(num_heads):
            y = y + jnp.dot(o[h], wp_ref[h], preferred_element_type=jnp.float32)
        o_ref[0] = (y + b_ref[...]).astype(o_ref.dtype)


def flash_mha_projected(q, k, v, wp_heads, bias, *, tile, out_dtype=jnp.float32,
                        approx_recip=True):
    B, H, T_pad, dh = q.shape
    D = H * dh
    nt = T_pad // tile

    # Lower-triangular (qi, ki) tile pairs, qi-major: each output block is
    # fully accumulated before the grid moves to the next q tile.
    qi_list, ki_list = [], []
    for qi in range(nt):
        for ki in range(qi + 1):
            qi_list.append(qi)
            ki_list.append(ki)
    n_pairs = len(qi_list)
    qi_map = jnp.array(qi_list, dtype=jnp.int32)
    ki_map = jnp.array(ki_list, dtype=jnp.int32)

    kernel = functools.partial(_flash_mha_kernel, num_heads=H, d_head=dh,
                               approx_recip=approx_recip)

    flops = B * n_pairs * 4 * tile * tile * D + 2 * B * T_pad * D * D
    transcendentals = B * n_pairs * H * tile * tile
    bytes_accessed = (2 * B * T_pad * D                       # q read once
                      + 2 * 2 * B * n_pairs * tile * D        # k, v re-reads
                      + 2 * D * D + 4 * D                     # wp, bias
                      + B * T_pad * D * jnp.dtype(out_dtype).itemsize)

    head_block = (1, H, tile, dh)
    grid_spec = pltpu.PrefetchScalarGridSpec(
        num_scalar_prefetch=2,
        grid=(B, n_pairs),
        in_specs=[
            pl.BlockSpec(head_block, lambda b, p, qm, km: (b, 0, qm[p], 0)),
            pl.BlockSpec(head_block, lambda b, p, qm, km: (b, 0, km[p], 0)),
            pl.BlockSpec(head_block, lambda b, p, qm, km: (b, 0, km[p], 0)),
            _resident_spec((H, dh, D), lambda b, p, qm, km: (0, 0, 0)),
            pl.BlockSpec((1, D), lambda b, p, qm, km: (0, 0)),
        ],
        out_specs=pl.BlockSpec((1, tile, D), lambda b, p, qm, km: (b, qm[p], 0)),
        scratch_shapes=[
            pltpu.VMEM((H, tile, 1), jnp.float32),    # running max  (all heads)
            pltpu.VMEM((H, tile, 1), jnp.float32),    # running sum  (all heads)
            pltpu.VMEM((H, tile, dh), jnp.float32),   # output accumulator
        ],
    )
    return pl.pallas_call(
        kernel,
        out_shape=jax.ShapeDtypeStruct((B, T_pad, D), out_dtype),
        grid_spec=grid_spec,
        compiler_params=pltpu.CompilerParams(
            dimension_semantics=("parallel", "arbitrary"),
            vmem_limit_bytes=_VMEM_LIMIT),
        cost_estimate=pl.CostEstimate(flops=int(flops),
                                      transcendentals=int(transcendentals),
                                      bytes_accessed=int(bytes_accessed)),
    )(qi_map, ki_map, q, k, v, wp_heads, bias)


# ---------------------------------------------------------------------------
# Parameter packing + full forward
# ---------------------------------------------------------------------------
def pack_params(params):
    """Pack per-head weights into MXU-shaped bf16 operands."""
    H, D, dh = params["wq"].shape

    def heads_to_cols(w):                       # (H, D, dh) -> (D, H*dh)
        return jnp.transpose(w, (1, 0, 2)).reshape(D, H * dh)

    wqkv = jnp.concatenate([heads_to_cols(params["wq"]),
                            heads_to_cols(params["wk"]),
                            heads_to_cols(params["wv"])], axis=1)    # (D, 3D)
    wp_heads = params["wp_t"].reshape(H, dh, D)                      # (H, dh, D)
    return {
        "wqkv": wqkv.astype(jnp.bfloat16),
        "wp_heads": wp_heads.astype(jnp.bfloat16),
        "bias": params["bp"].reshape(1, D).astype(jnp.float32),
    }


def multi_head_attention(x, params, *, seq_tile=256, out_dtype=jnp.float32,
                         approx_recip=True):
    """Forward pass equivalent to the PyTorch MultiHeadAttention module."""
    B, T, D = x.shape
    H, _, dh = params["wq"].shape
    packed = pack_params(params)

    # Tile selection: pad T to a tile multiple (causality hides padded keys;
    # padded query rows are sliced away) — never fall back to a full-T tile.
    tile = min(seq_tile, _round_up(T, 8))
    tile = _round_up(tile, 8)
    T_pad = _round_up(T, tile)

    x_bf16 = x.astype(jnp.bfloat16)
    if T_pad != T:
        x_bf16 = jnp.pad(x_bf16, ((0, 0), (0, T_pad - T), (0, 0)))

    q, k, v = qkv_projection(x_bf16, packed["wqkv"], num_heads=H, d_head=dh,
                             tile=tile)
    out = flash_mha_projected(q, k, v, packed["wp_heads"], packed["bias"],
                              tile=tile, out_dtype=out_dtype,
                              approx_recip=approx_recip)
    if T_pad != T:
        out = out[:, :T]
    return out


def init_params(key, d_model, num_heads):
    d_head = d_model // num_heads
    k1, k2, k3, k4, k5 = jax.random.split(key, 5)
    scale = 1.0 / jnp.sqrt(jnp.float32(d_model))
    # per-head projections, stored pre-transposed as (H, d_model, d_head)
    wq = jax.random.normal(k1, (num_heads, d_model, d_head), jnp.float32) * scale
    wk = jax.random.normal(k2, (num_heads, d_model, d_head), jnp.float32) * scale
    wv = jax.random.normal(k3, (num_heads, d_model, d_head), jnp.float32) * scale
    # output projection: PyTorch weight (D, D); store transposed (in, out)
    wp_t = jax.random.normal(k4, (d_model, d_model), jnp.float32) * scale
    bp = jax.random.normal(k5, (d_model,), jnp.float32) * scale
    return {"wq": wq, "wk": wk, "wv": wv, "wp_t": wp_t, "bp": bp}


# ---------------------------------------------------------------------------
# References for correctness checking
# ---------------------------------------------------------------------------
def _reference_f32(x, params):
    """Faithful f32 re-implementation of the PyTorch forward."""
    B, T, D = x.shape
    H, _, dh = params["wq"].shape
    q = jnp.einsum("btd,hde->bhte", x, params["wq"])
    k = jnp.einsum("btd,hde->bhte", x, params["wk"])
    v = jnp.einsum("btd,hde->bhte", x, params["wv"])
    s = jnp.einsum("bhte,bhse->bhts", q, k) * (dh ** -0.5)
    mask = jnp.tril(jnp.ones((T, T), dtype=bool))
    s = jnp.where(mask[None, None], s, -jnp.inf)
    w = jax.nn.softmax(s, axis=-1)
    o = jnp.einsum("bhts,bhse->bhte", w, v)
    o = jnp.transpose(o, (0, 2, 1, 3)).reshape(B, T, D)
    return o @ params["wp_t"] + params["bp"]


def _reference_bf16(x, params):
    """Mirrors the kernel's bf16-input / f32-accumulation numerics."""
    B, T, D = x.shape
    H, _, dh = params["wq"].shape
    packed = pack_params(params)
    xb = x.astype(jnp.bfloat16)
    y = jnp.einsum("btd,de->bte", xb, packed["wqkv"],
                   preferred_element_type=jnp.float32)               # (B,T,3D)
    q = (y[..., :D] * (dh ** -0.5)).astype(jnp.bfloat16)
    k = y[..., D:2 * D].astype(jnp.bfloat16)
    v = y[..., 2 * D:].astype(jnp.bfloat16)

    def split(t):                                                    # (B,H,T,dh)
        return jnp.transpose(t.reshape(B, T, H, dh), (0, 2, 1, 3))

    q4, k4, v4 = split(q), split(k), split(v)
    s = jnp.einsum("bhte,bhse->bhts", q4, k4,
                   preferred_element_type=jnp.float32)
    mask = jnp.tril(jnp.ones((T, T), dtype=bool))
    s = jnp.where(mask[None, None], s, -jnp.inf)
    w = jax.nn.softmax(s, axis=-1).astype(jnp.bfloat16)
    o = jnp.einsum("bhts,bhse->bhte", w, v4,
                   preferred_element_type=jnp.float32)
    o = jnp.transpose(o, (0, 2, 1, 3)).reshape(B, T, D).astype(jnp.bfloat16)
    wp = packed["wp_heads"].reshape(D, D)
    return jnp.einsum("btd,de->bte", o, wp,
                      preferred_element_type=jnp.float32) + packed["bias"]


if __name__ == "__main__":
    key = jax.random.PRNGKey(0)

    def check(B, T, d_model, num_heads, seq_tile):
        kx, kp = jax.random.split(jax.random.fold_in(key, T))
        x = jax.random.normal(kx, (B, T, d_model), jnp.float32)
        params = init_params(kp, d_model, num_heads)
        fn = jax.jit(functools.partial(multi_head_attention, seq_tile=seq_tile))
        out = jax.block_until_ready(fn(x, params))
        assert out.shape == (B, T, d_model)
        ref_b = _reference_bf16(x, params)   # same precision profile as kernel
        ref_f = _reference_f32(x, params)    # PyTorch-faithful f32 semantics
        assert jnp.allclose(out, ref_b, atol=3e-2, rtol=3e-2), \
            f"mismatch vs bf16 reference (T={T})"
        assert jnp.allclose(out, ref_f, atol=1e-1, rtol=1e-1), \
            f"mismatch vs f32 reference (T={T})"

    # Primary small demo shape.
    check(B=2, T=8, d_model=32, num_heads=4, seq_tile=256)
    # Multi-tile case: exercises the flattened lower-triangular pair grid,
    # init/finalize phases and masked vs unmasked KV tiles.
    check(B=2, T=32, d_model=32, num_heads=4, seq_tile=8)
    # Non-divisible T: exercises the padding path.
    check(B=2, T=12, d_model=32, num_heads=4, seq_tile=256)

    print("KERNEL_OK")
</pallas_src>

<mosaic_0001>
module attributes {stable_mosaic.version = 11 : i64} {
  func.func @_qkv_proj_kernel(%arg0: i32, %arg1: i32, %arg2: memref<1x8x32xbf16, #tpu.memory_space<vmem>>, %arg3: memref<32x96xbf16, #tpu.memory_space<vmem>>, %arg4: memref<1x4x8x8xbf16, #tpu.memory_space<vmem>>, %arg5: memref<1x4x8x8xbf16, #tpu.memory_space<vmem>>, %arg6: memref<1x4x8x8xbf16, #tpu.memory_space<vmem>>) attributes {dimension_semantics = [#tpu.dimension_semantics<parallel>, #tpu.dimension_semantics<parallel>], iteration_bounds = array<i64: 2, 1>, scalar_prefetch = 0 : i64, scratch_operands = 0 : i64, tpu.core_type = #tpu.core_type<tc>, window_params = [{transform_indices = @transform_0, window_bounds = array<i64: 1, 8, 32>}, {pipeline_mode = #tpu.pipeline_mode<synchronous>, transform_indices = @transform_1, window_bounds = array<i64: 32, 96>}, {transform_indices = @transform_2, window_bounds = array<i64: 1, 4, 8, 8>}, {transform_indices = @transform_3, window_bounds = array<i64: 1, 4, 8, 8>}, {transform_indices = @transform_4, window_bounds = array<i64: 1, 4, 8, 8>}]} {
    %c0 = arith.constant 0 : index
    %c0_0 = arith.constant 0 : index
    %c0_1 = arith.constant 0 : index
    %0 = vector.load %arg2[%c0, %c0_0, %c0_1] : memref<1x8x32xbf16, #tpu.memory_space<vmem>>, vector<1x8x32xbf16>
    %1 = vector.shape_cast %0 : vector<1x8x32xbf16> to vector<8x32xbf16>
    %c0_2 = arith.constant 0 : index
    %c0_3 = arith.constant 0 : index
    %2 = vector.load %arg3[%c0_2, %c0_3] : memref<32x96xbf16, #tpu.memory_space<vmem>>, vector<32x96xbf16>
    %cst = arith.constant dense<0.000000e+00> : vector<8x96xf32>
    %3 = tpu.matmul %1, %2, %cst {dimension_numbers = #tpu.dot_dimension_numbers<[1], [0], [0], [1], [0, 0, 1, 1], [], []>} : vector<8x32xbf16>, vector<32x96xbf16>, vector<8x96xf32> -> vector<8x96xf32>
    %4 = vector.extract_strided_slice %3 {offsets = [0, 0], sizes = [8, 8], strides = [1, 1]} : vector<8x96xf32> to vector<8x8xf32>
    %cst_4 = arith.constant 0.353553385 : f32
    %5 = vector.broadcast %cst_4 : f32 to vector<8x8xf32>
    %6 = arith.mulf %4, %5 : vector<8x8xf32>
    %7 = arith.truncf %6 : vector<8x8xf32> to vector<8x8xbf16>
    %c0_5 = arith.constant 0 : index
    %c0_6 = arith.constant 0 : index
    %c0_7 = arith.constant 0 : index
    %c0_8 = arith.constant 0 : index
    %8 = vector.load %arg4[%c0_5, %c0_6, %c0_7, %c0_8] : memref<1x4x8x8xbf16, #tpu.memory_space<vmem>>, vector<1x1x8x8xbf16>
    %9 = vector.shape_cast %8 : vector<1x1x8x8xbf16> to vector<8x8xbf16>
    %10 = vector.shape_cast %7 : vector<8x8xbf16> to vector<1x1x8x8xbf16>
    tpu.vector_store %arg4[%c0_5, %c0_6, %c0_7, %c0_8], %10 {strides = array<i32>} : memref<1x4x8x8xbf16, #tpu.memory_space<vmem>>, vector<1x1x8x8xbf16>,
    %11 = vector.extract_strided_slice %3 {offsets = [0, 32], sizes = [8, 8], strides = [1, 1]} : vector<8x96xf32> to vector<8x8xf32>
    %12 = arith.truncf %11 : vector<8x8xf32> to vector<8x8xbf16>
    %c0_9 = arith.constant 0 : index
    %c0_10 = arith.constant 0 : index
    %c0_11 = arith.constant 0 : index
    %c0_12 = arith.constant 0 : index
    %13 = vector.load %arg5[%c0_9, %c0_10, %c0_11, %c0_12] : memref<1x4x8x8xbf16, #tpu.memory_space<vmem>>, vector<1x1x8x8xbf16>
    %14 = vector.shape_cast %13 : vector<1x1x8x8xbf16> to vector<8x8xbf16>
    %15 = vector.shape_cast %12 : vector<8x8xbf16> to vector<1x1x8x8xbf16>
    tpu.vector_store %arg5[%c0_9, %c0_10, %c0_11, %c0_12], %15 {strides = array<i32>} : memref<1x4x8x8xbf16, #tpu.memory_space<vmem>>, vector<1x1x8x8xbf16>,
    %16 = vector.extract_strided_slice %3 {offsets = [0, 64], sizes = [8, 8], strides = [1, 1]} : vector<8x96xf32> to vector<8x8xf32>
    %17 = arith.truncf %16 : vector<8x8xf32> to vector<8x8xbf16>
    %c0_13 = arith.constant 0 : index
    %c0_14 = arith.constant 0 : index
    %c0_15 = arith.constant 0 : index
    %c0_16 = arith.constant 0 : index
    %18 = vector.load %arg6[%c0_13, %c0_14, %c0_15, %c0_16] : memref<1x4x8x8xbf16, #tpu.memory_space<vmem>>, vector<1x1x8x8xbf16>
    %19 = vector.shape_cast %18 : vector<1x1x8x8xbf16> to vector<8x8xbf16>
    %20 = vector.shape_cast %17 : vector<8x8xbf16> to vector<1x1x8x8xbf16>
    tpu.vector_store %arg6[%c0_13, %c0_14, %c0_15, %c0_16], %20 {strides = array<i32>} : memref<1x4x8x8xbf16, #tpu.memory_space<vmem>>, vector<1x1x8x8xbf16>,
    %21 = vector.extract_strided_slice %3 {offsets = [0, 8], sizes = [8, 8], strides = [1, 1]} : vector<8x96xf32> to vector<8x8xf32>
    %cst_17 = arith.constant 0.353553385 : f32
    %22 = vector.broadcast %cst_17 : f32 to vector<8x8xf32>
    %23 = arith.mulf %21, %22 : vector<8x8xf32>
    %24 = arith.truncf %23 : vector<8x8xf32> to vector<8x8xbf16>
    %c0_18 = arith.constant 0 : index
    %c1 = arith.constant 1 : index
    %c0_19 = arith.constant 0 : index
    %c0_20 = arith.constant 0 : index
    %25 = vector.load %arg4[%c0_18, %c1, %c0_19, %c0_20] : memref<1x4x8x8xbf16, #tpu.memory_space<vmem>>, vector<1x1x8x8xbf16>
    %26 = vector.shape_cast %25 : vector<1x1x8x8xbf16> to vector<8x8xbf16>
    %27 = vector.shape_cast %24 : vector<8x8xbf16> to vector<1x1x8x8xbf16>
    tpu.vector_store %arg4[%c0_18, %c1, %c0_19, %c0_20], %27 {strides = array<i32>} : memref<1x4x8x8xbf16, #tpu.memory_space<vmem>>, vector<1x1x8x8xbf16>,
    %28 = vector.extract_strided_slice %3 {offsets = [0, 40], sizes = [8, 8], strides = [1, 1]} : vector<8x96xf32> to vector<8x8xf32>
    %29 = arith.truncf %28 : vector<8x8xf32> to vector<8x8xbf16>
    %c0_21 = arith.constant 0 : index
    %c1_22 = arith.constant 1 : index
    %c0_23 = arith.constant 0 : index
    %c0_24 = arith.constant 0 : index
    %30 = vector.load %arg5[%c0_21, %c1_22, %c0_23, %c0_24] : memref<1x4x8x8xbf16, #tpu.memory_space<vmem>>, vector<1x1x8x8xbf16>
    %31 = vector.shape_cast %30 : vector<1x1x8x8xbf16> to vector<8x8xbf16>
    %32 = vector.shape_cast %29 : vector<8x8xbf16> to vector<1x1x8x8xbf16>
    tpu.vector_store %arg5[%c0_21, %c1_22, %c0_23, %c0_24], %32 {strides = array<i32>} : memref<1x4x8x8xbf16, #tpu.memory_space<vmem>>, vector<1x1x8x8xbf16>,
    %33 = vector.extract_strided_slice %3 {offsets = [0, 72], sizes = [8, 8], strides = [1, 1]} : vector<8x96xf32> to vector<8x8xf32>
    %34 = arith.truncf %33 : vector<8x8xf32> to vector<8x8xbf16>
    %c0_25 = arith.constant 0 : index
    %c1_26 = arith.constant 1 : index
    %c0_27 = arith.constant 0 : index
    %c0_28 = arith.constant 0 : index
    %35 = vector.load %arg6[%c0_25, %c1_26, %c0_27, %c0_28] : memref<1x4x8x8xbf16, #tpu.memory_space<vmem>>, vector<1x1x8x8xbf16>
    %36 = vector.shape_cast %35 : vector<1x1x8x8xbf16> to vector<8x8xbf16>
    %37 = vector.shape_cast %34 : vector<8x8xbf16> to vector<1x1x8x8xbf16>
    tpu.vector_store %arg6[%c0_25, %c1_26, %c0_27, %c0_28], %37 {strides = array<i32>} : memref<1x4x8x8xbf16, #tpu.memory_space<vmem>>, vector<1x1x8x8xbf16>,
    %38 = vector.extract_strided_slice %3 {offsets = [0, 16], sizes = [8, 8], strides = [1, 1]} : vector<8x96xf32> to vector<8x8xf32>
    %cst_29 = arith.constant 0.353553385 : f32
    %39 = vector.broadcast %cst_29 : f32 to vector<8x8xf32>
    %40 = arith.mulf %38, %39 : vector<8x8xf32>
    %41 = arith.truncf %40 : vector<8x8xf32> to vector<8x8xbf16>
    %c0_30 = arith.constant 0 : index
    %c2 = arith.constant 2 : index
    %c0_31 = arith.constant 0 : index
    %c0_32 = arith.constant 0 : index
    %42 = vector.load %arg4[%c0_30, %c2, %c0_31, %c0_32] : memref<1x4x8x8xbf16, #tpu.memory_space<vmem>>, vector<1x1x8x8xbf16>
    %43 = vector.shape_cast %42 : vector<1x1x8x8xbf16> to vector<8x8xbf16>
    %44 = vector.shape_cast %41 : vector<8x8xbf16> to vector<1x1x8x8xbf16>
    tpu.vector_store %arg4[%c0_30, %c2, %c0_31, %c0_32], %44 {strides = array<i32>} : memref<1x4x8x8xbf16, #tpu.memory_space<vmem>>, vector<1x1x8x8xbf16>,
    %45 = vector.extract_strided_slice %3 {offsets = [0, 48], sizes = [8, 8], strides = [1, 1]} : vector<8x96xf32> to vector<8x8xf32>
    %46 = arith.truncf %45 : vector<8x8xf32> to vector<8x8xbf16>
    %c0_33 = arith.constant 0 : index
    %c2_34 = arith.constant 2 : index
    %c0_35 = arith.constant 0 : index
    %c0_36 = arith.constant 0 : index
    %47 = vector.load %arg5[%c0_33, %c2_34, %c0_35, %c0_36] : memref<1x4x8x8xbf16, #tpu.memory_space<vmem>>, vector<1x1x8x8xbf16>
    %48 = vector.shape_cast %47 : vector<1x1x8x8xbf16> to vector<8x8xbf16>
    %49 = vector.shape_cast %46 : vector<8x8xbf16> to vector<1x1x8x8xbf16>
    tpu.vector_store %arg5[%c0_33, %c2_34, %c0_35, %c0_36], %49 {strides = array<i32>} : memref<1x4x8x8xbf16, #tpu.memory_space<vmem>>, vector<1x1x8x8xbf16>,
    %50 = vector.extract_strided_slice %3 {offsets = [0, 80], sizes = [8, 8], strides = [1, 1]} : vector<8x96xf32> to vector<8x8xf32>
    %51 = arith.truncf %50 : vector<8x8xf32> to vector<8x8xbf16>
    %c0_37 = arith.constant 0 : index
    %c2_38 = arith.constant 2 : index
    %c0_39 = arith.constant 0 : index
    %c0_40 = arith.constant 0 : index
    %52 = vector.load %arg6[%c0_37, %c2_38, %c0_39, %c0_40] : memref<1x4x8x8xbf16, #tpu.memory_space<vmem>>, vector<1x1x8x8xbf16>
    %53 = vector.shape_cast %52 : vector<1x1x8x8xbf16> to vector<8x8xbf16>
    %54 = vector.shape_cast %51 : vector<8x8xbf16> to vector<1x1x8x8xbf16>
    tpu.vector_store %arg6[%c0_37, %c2_38, %c0_39, %c0_40], %54 {strides = array<i32>} : memref<1x4x8x8xbf16, #tpu.memory_space<vmem>>, vector<1x1x8x8xbf16>,
    %55 = vector.extract_strided_slice %3 {offsets = [0, 24], sizes = [8, 8], strides = [1, 1]} : vector<8x96xf32> to vector<8x8xf32>
    %cst_41 = arith.constant 0.353553385 : f32
    %56 = vector.broadcast %cst_41 : f32 to vector<8x8xf32>
    %57 = arith.mulf %55, %56 : vector<8x8xf32>
    %58 = arith.truncf %57 : vector<8x8xf32> to vector<8x8xbf16>
    %c0_42 = arith.constant 0 : index
    %c3 = arith.constant 3 : index
    %c0_43 = arith.constant 0 : index
    %c0_44 = arith.constant 0 : index
    %59 = vector.load %arg4[%c0_42, %c3, %c0_43, %c0_44] : memref<1x4x8x8xbf16, #tpu.memory_space<vmem>>, vector<1x1x8x8xbf16>
    %60 = vector.shape_cast %59 : vector<1x1x8x8xbf16> to vector<8x8xbf16>
    %61 = vector.shape_cast %58 : vector<8x8xbf16> to vector<1x1x8x8xbf16>
    tpu.vector_store %arg4[%c0_42, %c3, %c0_43, %c0_44], %61 {strides = array<i32>} : memref<1x4x8x8xbf16, #tpu.memory_space<vmem>>, vector<1x1x8x8xbf16>,
    %62 = vector.extract_strided_slice %3 {offsets = [0, 56], sizes = [8, 8], strides = [1, 1]} : vector<8x96xf32> to vector<8x8xf32>
    %63 = arith.truncf %62 : vector<8x8xf32> to vector<8x8xbf16>
    %c0_45 = arith.constant 0 : index
    %c3_46 = arith.constant 3 : index
    %c0_47 = arith.constant 0 : index
    %c0_48 = arith.constant 0 : index
    %64 = vector.load %arg5[%c0_45, %c3_46, %c0_47, %c0_48] : memref<1x4x8x8xbf16, #tpu.memory_space<vmem>>, vector<1x1x8x8xbf16>
    %65 = vector.shape_cast %64 : vector<1x1x8x8xbf16> to vector<8x8xbf16>
    %66 = vector.shape_cast %63 : vector<8x8xbf16> to vector<1x1x8x8xbf16>
    tpu.vector_store %arg5[%c0_45, %c3_46, %c0_47, %c0_48], %66 {strides = array<i32>} : memref<1x4x8x8xbf16, #tpu.memory_space<vmem>>, vector<1x1x8x8xbf16>,
    %67 = vector.extract_strided_slice %3 {offsets = [0, 88], sizes = [8, 8], strides = [1, 1]} : vector<8x96xf32> to vector<8x8xf32>
    %68 = arith.truncf %67 : vector<8x8xf32> to vector<8x8xbf16>
    %c0_49 = arith.constant 0 : index
    %c3_50 = arith.constant 3 : index
    %c0_51 = arith.constant 0 : index
    %c0_52 = arith.constant 0 : index
    %69 = vector.load %arg6[%c0_49, %c3_50, %c0_51, %c0_52] : memref<1x4x8x8xbf16, #tpu.memory_space<vmem>>, vector<1x1x8x8xbf16>
    %70 = vector.shape_cast %69 : vector<1x1x8x8xbf16> to vector<8x8xbf16>
    %71 = vector.shape_cast %68 : vector<8x8xbf16> to vector<1x1x8x8xbf16>
    tpu.vector_store %arg6[%c0_49, %c3_50, %c0_51, %c0_52], %71 {strides = array<i32>} : memref<1x4x8x8xbf16, #tpu.memory_space<vmem>>, vector<1x1x8x8xbf16>,
    return
  }
  func.func @transform_0(%arg0: i32, %arg1: i32) -> (i32, i32, i32) {
    %c0_i32 = arith.constant 0 : i32
    %c0_i32_0 = arith.constant 0 : i32
    return %arg0, %arg1, %c0_i32 : i32, i32, i32
  }
  func.func @transform_1(%arg0: i32, %arg1: i32) -> (i32, i32) {
    %c0_i32 = arith.constant 0 : i32
    %c0_i32_0 = arith.constant 0 : i32
    %c0_i32_1 = arith.constant 0 : i32
    return %c0_i32, %c0_i32_0 : i32, i32
  }
  func.func @transform_2(%arg0: i32, %arg1: i32) -> (i32, i32, i32, i32) {
    %c0_i32 = arith.constant 0 : i32
    %c0_i32_0 = arith.constant 0 : i32
    %c0_i32_1 = arith.constant 0 : i32
    return %arg0, %c0_i32, %arg1, %c0_i32_0 : i32, i32, i32, i32
  }
  func.func @transform_3(%arg0: i32, %arg1: i32) -> (i32, i32, i32, i32) {
    %c0_i32 = arith.constant 0 : i32
    %c0_i32_0 = arith.constant 0 : i32
    %c0_i32_1 = arith.constant 0 : i32
    return %arg0, %c0_i32, %arg1, %c0_i32_0 : i32, i32, i32, i32
  }
  func.func @transform_4(%arg0: i32, %arg1: i32) -> (i32, i32, i32, i32) {
    %c0_i32 = arith.constant 0 : i32
    %c0_i32_0 = arith.constant 0 : i32
    %c0_i32_1 = arith.constant 0 : i32
    return %arg0, %c0_i32, %arg1, %c0_i32_0 : i32, i32, i32, i32
  }
}

module attributes {stable_mosaic.version = 11 : i64} {
  func.func @_flash_mha_kernel(%arg0: i32, %arg1: i32, %arg2: memref<1xi32, #tpu.memory_space<smem>>, %arg3: memref<1xi32, #tpu.memory_space<smem>>, %arg4: memref<1x4x8x8xbf16, #tpu.memory_space<vmem>>, %arg5: memref<1x4x8x8xbf16, #tpu.memory_space<vmem>>, %arg6: memref<1x4x8x8xbf16, #tpu.memory_space<vmem>>, %arg7: memref<4x8x32xbf16, #tpu.memory_space<vmem>>, %arg8: memref<1x32xf32, #tpu.memory_space<vmem>>, %arg9: memref<1x8x32xf32, #tpu.memory_space<vmem>>, %arg10: memref<4x8x1xf32, #tpu.memory_space<vmem>>, %arg11: memref<4x8x1xf32, #tpu.memory_space<vmem>>, %arg12: memref<4x8x8xf32, #tpu.memory_space<vmem>>) attributes {dimension_semantics = [#tpu.dimension_semantics<parallel>, #tpu.dimension_semantics<arbitrary>], iteration_bounds = array<i64: 2, 1>, scalar_prefetch = 2 : i64, scratch_operands = 3 : i64, tpu.core_type = #tpu.core_type<tc>, window_params = [{transform_indices = @transform_0, window_bounds = array<i64: 1, 4, 8, 8>}, {transform_indices = @transform_1, window_bounds = array<i64: 1, 4, 8, 8>}, {transform_indices = @transform_2, window_bounds = array<i64: 1, 4, 8, 8>}, {pipeline_mode = #tpu.pipeline_mode<synchronous>, transform_indices = @transform_3, window_bounds = array<i64: 4, 8, 32>}, {pipeline_mode = #tpu.pipeline_mode<synchronous>, transform_indices = @transform_4, window_bounds = array<i64: 1, 32>}, {transform_indices = @transform_5, window_bounds = array<i64: 1, 8, 32>}]} {
    %0 = arith.index_cast %arg1 : i32 to index
    %1 = memref.load %arg2[%0] : memref<1xi32, #tpu.memory_space<smem>>
    %2 = arith.index_cast %arg1 : i32 to index
    %3 = memref.load %arg3[%2] : memref<1xi32, #tpu.memory_space<smem>>
    %c0_i32 = arith.constant 0 : i32
    %4 = arith.cmpi eq, %3, %c0_i32 : i32
    %5 = arith.extui %4 : i1 to i32
    %c0_i32_0 = arith.constant 0 : i32
    %6 = arith.cmpi ne, %5, %c0_i32_0 : i32
    scf.if %6 {
      %cst = arith.constant 0xFF800000 : f32
      %13 = vector.broadcast %cst : f32 to vector<4x8x1xf32>
      %c0 = arith.constant 0 : index
      %c0_3 = arith.constant 0 : index
      %c0_4 = arith.constant 0 : index
      %14 = vector.load %arg10[%c0, %c0_3, %c0_4] : memref<4x8x1xf32, #tpu.memory_space<vmem>>, vector<4x8x1xf32>
      tpu.vector_store %arg10[%c0, %c0_3, %c0_4], %13 {strides = array<i32>} : memref<4x8x1xf32, #tpu.memory_space<vmem>>, vector<4x8x1xf32>,
      %cst_5 = arith.constant 0.000000e+00 : f32
      %15 = vector.broadcast %cst_5 : f32 to vector<4x8x1xf32>
      %c0_6 = arith.constant 0 : index
      %c0_7 = arith.constant 0 : index
      %c0_8 = arith.constant 0 : index
      %16 = vector.load %arg11[%c0_6, %c0_7, %c0_8] : memref<4x8x1xf32, #tpu.memory_space<vmem>>, vector<4x8x1xf32>
      tpu.vector_store %arg11[%c0_6, %c0_7, %c0_8], %15 {strides = array<i32>} : memref<4x8x1xf32, #tpu.memory_space<vmem>>, vector<4x8x1xf32>,
      %cst_9 = arith.constant 0.000000e+00 : f32
      %17 = vector.broadcast %cst_9 : f32 to vector<4x8x8xf32>
      %c0_10 = arith.constant 0 : index
      %c0_11 = arith.constant 0 : index
      %c0_12 = arith.constant 0 : index
      %18 = vector.load %arg12[%c0_10, %c0_11, %c0_12] : memref<4x8x8xf32, #tpu.memory_space<vmem>>, vector<4x8x8xf32>
      tpu.vector_store %arg12[%c0_10, %c0_11, %c0_12], %17 {strides = array<i32>} : memref<4x8x8xf32, #tpu.memory_space<vmem>>, vector<4x8x8xf32>,
    } else {
    }
    %7 = arith.cmpi slt, %3, %1 : i32
    %8 = arith.extui %7 : i1 to i32
    %c0_i32_1 = arith.constant 0 : i32
    %9 = arith.cmpi ne, %8, %c0_i32_1 : i32
    scf.if %9 {
      %c0 = arith.constant 0 : index
      %c0_3 = arith.constant 0 : index
      %c0_4 = arith.constant 0 : index
      %c0_5 = arith.constant 0 : index
      %13 = vector.load %arg4[%c0, %c0_3, %c0_4, %c0_5] : memref<1x4x8x8xbf16, #tpu.memory_space<vmem>>, vector<1x4x8x8xbf16>
      %14 = vector.shape_cast %13 : vector<1x4x8x8xbf16> to vector<4x8x8xbf16>
      %c0_6 = arith.constant 0 : index
      %c0_7 = arith.constant 0 : index
      %c0_8 = arith.constant 0 : index
      %c0_9 = arith.constant 0 : index
      %15 = vector.load %arg5[%c0_6, %c0_7, %c0_8, %c0_9] : memref<1x4x8x8xbf16, #tpu.memory_space<vmem>>, vector<1x4x8x8xbf16>
      %16 = vector.shape_cast %15 : vector<1x4x8x8xbf16> to vector<4x8x8xbf16>
      %c0_10 = arith.constant 0 : index
      %c0_11 = arith.constant 0 : index
      %c0_12 = arith.constant 0 : index
      %c0_13 = arith.constant 0 : index
      %17 = vector.load %arg6[%c0_10, %c0_11, %c0_12, %c0_13] : memref<1x4x8x8xbf16, #tpu.memory_space<vmem>>, vector<1x4x8x8xbf16>
      %18 = vector.shape_cast %17 : vector<1x4x8x8xbf16> to vector<4x8x8xbf16>
      "tpu.trace_start"() <{level = 10 : i32, message = "hqd,hkd->hqk"}> : () -> ()
      %cst = arith.constant dense<0.000000e+00> : vector<4x8x8xf32>
      %19 = tpu.matmul %14, %16, %cst {dimension_numbers = #tpu.dot_dimension_numbers<[2], [2], [1], [1], [0, 0, 0, 1, 1, 1], [0], [0]>} : vector<4x8x8xbf16>, vector<4x8x8xbf16>, vector<4x8x8xf32> -> vector<4x8x8xf32>
      "tpu.trace_stop"() : () -> ()
      %c0_14 = arith.constant 0 : index
      %c0_15 = arith.constant 0 : index
      %c0_16 = arith.constant 0 : index
      %20 = vector.load %arg10[%c0_14, %c0_15, %c0_16] : memref<4x8x1xf32, #tpu.memory_space<vmem>>, vector<4x8x1xf32>
      %c0_17 = arith.constant 0 : index
      %c0_18 = arith.constant 0 : index
      %c0_19 = arith.constant 0 : index
      %21 = vector.load %arg11[%c0_17, %c0_18, %c0_19] : memref<4x8x1xf32, #tpu.memory_space<vmem>>, vector<4x8x1xf32>
      %cst_20 = arith.constant dense<0xFF800000> : vector<4x8xf32>
      %22 = vector.multi_reduction <maximumf>, %19, %cst_20 [2] : vector<4x8x8xf32> to vector<4x8xf32>
      %23 = vector.shape_cast %22 : vector<4x8xf32> to vector<4x8x1xf32>
      %24 = arith.maximumf %20, %23 : vector<4x8x1xf32>
      %25 = arith.subf %20, %24 : vector<4x8x1xf32>
      %26 = math.exp %25 : vector<4x8x1xf32>
      %27 = vector.broadcast %24 : vector<4x8x1xf32> to vector<4x8x8xf32>
      %28 = arith.subf %19, %27 : vector<4x8x8xf32>
      %29 = math.exp %28 : vector<4x8x8xf32>
      %30 = arith.mulf %26, %21 : vector<4x8x1xf32>
      %cst_21 = arith.constant dense<0.000000e+00> : vector<4x8xf32>
      %31 = vector.multi_reduction <add>, %29, %cst_21 [2] : vector<4x8x8xf32> to vector<4x8xf32>
      %32 = vector.shape_cast %31 : vector<4x8xf32> to vector<4x8x1xf32>
      %33 = arith.addf %30, %32 : vector<4x8x1xf32>
      %c0_22 = arith.constant 0 : index
      %c0_23 = arith.constant 0 : index
      %c0_24 = arith.constant 0 : index
      %34 = vector.load %arg11[%c0_22, %c0_23, %c0_24] : memref<4x8x1xf32, #tpu.memory_space<vmem>>, vector<4x8x1xf32>
      tpu.vector_store %arg11[%c0_22, %c0_23, %c0_24], %33 {strides = array<i32>} : memref<4x8x1xf32, #tpu.memory_space<vmem>>, vector<4x8x1xf32>,
      %c0_25 = arith.constant 0 : index
      %c0_26 = arith.constant 0 : index
      %c0_27 = arith.constant 0 : index
      %35 = vector.load %arg10[%c0_25, %c0_26, %c0_27] : memref<4x8x1xf32, #tpu.memory_space<vmem>>, vector<4x8x1xf32>
      tpu.vector_store %arg10[%c0_25, %c0_26, %c0_27], %24 {strides = array<i32>} : memref<4x8x1xf32, #tpu.memory_space<vmem>>, vector<4x8x1xf32>,
      %36 = arith.truncf %29 : vector<4x8x8xf32> to vector<4x8x8xbf16>
      "tpu.trace_start"() <{level = 10 : i32, message = "hqk,hkd->hqd"}> : () -> ()
      %cst_28 = arith.constant dense<0.000000e+00> : vector<4x8x8xf32>
      %37 = tpu.matmul %36, %18, %cst_28 {dimension_numbers = #tpu.dot_dimension_numbers<[2], [1], [1], [2], [0, 0, 0, 1, 1, 2], [0], [0]>} : vector<4x8x8xbf16>, vector<4x8x8xbf16>, vector<4x8x8xf32> -> vector<4x8x8xf32>
      "tpu.trace_stop"() : () -> ()
      %c0_29 = arith.constant 0 : index
      %c0_30 = arith.constant 0 : index
      %c0_31 = arith.constant 0 : index
      %38 = vector.load %arg12[%c0_29, %c0_30, %c0_31] : memref<4x8x8xf32, #tpu.memory_space<vmem>>, vector<4x8x8xf32>
      %39 = vector.broadcast %26 : vector<4x8x1xf32> to vector<4x8x8xf32>
      %40 = arith.mulf %38, %39 : vector<4x8x8xf32>
      %41 = arith.addf %40, %37 : vector<4x8x8xf32>
      %c0_32 = arith.constant 0 : index
      %c0_33 = arith.constant 0 : index
      %c0_34 = arith.constant 0 : index
      %42 = vector.load %arg12[%c0_32, %c0_33, %c0_34] : memref<4x8x8xf32, #tpu.memory_space<vmem>>, vector<4x8x8xf32>
      tpu.vector_store %arg12[%c0_32, %c0_33, %c0_34], %41 {strides = array<i32>} : memref<4x8x8xf32, #tpu.memory_space<vmem>>, vector<4x8x8xf32>,
    } else {
    }
    %10 = arith.cmpi eq, %3, %1 : i32
    %11 = arith.extui %10 : i1 to i32
    %c0_i32_2 = arith.constant 0 : i32
    %12 = arith.cmpi ne, %11, %c0_i32_2 : i32
    scf.if %12 {
      %c0 = arith.constant 0 : index
      %c0_3 = arith.constant 0 : index
      %c0_4 = arith.constant 0 : index
      %c0_5 = arith.constant 0 : index
      %13 = vector.load %arg4[%c0, %c0_3, %c0_4, %c0_5] : memref<1x4x8x8xbf16, #tpu.memory_space<vmem>>, vector<1x4x8x8xbf16>
      %14 = vector.shape_cast %13 : vector<1x4x8x8xbf16> to vector<4x8x8xbf16>
      %c0_6 = arith.constant 0 : index
      %c0_7 = arith.constant 0 : index
      %c0_8 = arith.constant 0 : index
      %c0_9 = arith.constant 0 : index
      %15 = vector.load %arg5[%c0_6, %c0_7, %c0_8, %c0_9] : memref<1x4x8x8xbf16, #tpu.memory_space<vmem>>, vector<1x4x8x8xbf16>
      %16 = vector.shape_cast %15 : vector<1x4x8x8xbf16> to vector<4x8x8xbf16>
      %c0_10 = arith.constant 0 : index
      %c0_11 = arith.constant 0 : index
      %c0_12 = arith.constant 0 : index
      %c0_13 = arith.constant 0 : index
      %17 = vector.load %arg6[%c0_10, %c0_11, %c0_12, %c0_13] : memref<1x4x8x8xbf16, #tpu.memory_space<vmem>>, vector<1x4x8x8xbf16>
      %18 = vector.shape_cast %17 : vector<1x4x8x8xbf16> to vector<4x8x8xbf16>
      "tpu.trace_start"() <{level = 10 : i32, message = "hqd,hkd->hqk"}> : () -> ()
      %cst = arith.constant dense<0.000000e+00> : vector<4x8x8xf32>
      %19 = tpu.matmul %14, %16, %cst {dimension_numbers = #tpu.dot_dimension_numbers<[2], [2], [1], [1], [0, 0, 0, 1, 1, 1], [0], [0]>} : vector<4x8x8xbf16>, vector<4x8x8xbf16>, vector<4x8x8xf32> -> vector<4x8x8xf32>
      "tpu.trace_stop"() : () -> ()
      %20 = tpu.iota {dimensions = array<i32: 0>} : vector<8x8xi32>
      %21 = tpu.iota {dimensions = array<i32: 1>} : vector<8x8xi32>
      %22 = arith.cmpi sge, %20, %21 : vector<8x8xi32>
      %23 = vector.shape_cast %22 : vector<8x8xi1> to vector<1x8x8xi1>
      %cst_14 = arith.constant 0xFF800000 : f32
      %24 = vector.shape_cast %23 : vector<1x8x8xi1> to vector<1x8x8xi1>
      %25 = vector.broadcast %24 : vector<1x8x8xi1> to vector<4x8x8xi1>
      %26 = vector.broadcast %cst_14 : f32 to vector<4x8x8xf32>
      %27 = arith.select %25, %19, %26 : vector<4x8x8xi1>, vector<4x8x8xf32>
      %c0_15 = arith.constant 0 : index
      %c0_16 = arith.constant 0 : index
      %c0_17 = arith.constant 0 : index
      %28 = vector.load %arg10[%c0_15, %c0_16, %c0_17] : memref<4x8x1xf32, #tpu.memory_space<vmem>>, vector<4x8x1xf32>
      %c0_18 = arith.constant 0 : index
      %c0_19 = arith.constant 0 : index
      %c0_20 = arith.constant 0 : index
      %29 = vector.load %arg11[%c0_18, %c0_19, %c0_20] : memref<4x8x1xf32, #tpu.memory_space<vmem>>, vector<4x8x1xf32>
      %cst_21 = arith.constant dense<0xFF800000> : vector<4x8xf32>
      %30 = vector.multi_reduction <maximumf>, %27, %cst_21 [2] : vector<4x8x8xf32> to vector<4x8xf32>
      %31 = vector.shape_cast %30 : vector<4x8xf32> to vector<4x8x1xf32>
      %32 = arith.maximumf %28, %31 : vector<4x8x1xf32>
      %33 = arith.subf %28, %32 : vector<4x8x1xf32>
      %34 = math.exp %33 : vector<4x8x1xf32>
      %35 = vector.broadcast %32 : vector<4x8x1xf32> to vector<4x8x8xf32>
      %36 = arith.subf %27, %35 : vector<4x8x8xf32>
      %37 = math.exp %36 : vector<4x8x8xf32>
      %38 = arith.mulf %34, %29 : vector<4x8x1xf32>
      %cst_22 = arith.constant dense<0.000000e+00> : vector<4x8xf32>
      %39 = vector.multi_reduction <add>, %37, %cst_22 [2] : vector<4x8x8xf32> to vector<4x8xf32>
      %40 = vector.shape_cast %39 : vector<4x8xf32> to vector<4x8x1xf32>
      %41 = arith.addf %38, %40 : vector<4x8x1xf32>
      %c0_23 = arith.constant 0 : index
      %c0_24 = arith.constant 0 : index
      %c0_25 = arith.constant 0 : index
      %42 = vector.load %arg11[%c0_23, %c0_24, %c0_25] : memref<4x8x1xf32, #tpu.memory_space<vmem>>, vector<4x8x1xf32>
      tpu.vector_store %arg11[%c0_23, %c0_24, %c0_25], %41 {strides = array<i32>} : memref<4x8x1xf32, #tpu.memory_space<vmem>>, vector<4x8x1xf32>,
      %c0_26 = arith.constant 0 : index
      %c0_27 = arith.constant 0 : index
      %c0_28 = arith.constant 0 : index
      %43 = vector.load %arg10[%c0_26, %c0_27, %c0_28] : memref<4x8x1xf32, #tpu.memory_space<vmem>>, vector<4x8x1xf32>
      tpu.vector_store %arg10[%c0_26, %c0_27, %c0_28], %32 {strides = array<i32>} : memref<4x8x1xf32, #tpu.memory_space<vmem>>, vector<4x8x1xf32>,
      %44 = arith.truncf %37 : vector<4x8x8xf32> to vector<4x8x8xbf16>
      "tpu.trace_start"() <{level = 10 : i32, message = "hqk,hkd->hqd"}> : () -> ()
      %cst_29 = arith.constant dense<0.000000e+00> : vector<4x8x8xf32>
      %45 = tpu.matmul %44, %18, %cst_29 {dimension_numbers = #tpu.dot_dimension_numbers<[2], [1], [1], [2], [0, 0, 0, 1, 1, 2], [0], [0]>} : vector<4x8x8xbf16>, vector<4x8x8xbf16>, vector<4x8x8xf32> -> vector<4x8x8xf32>
      "tpu.trace_stop"() : () -> ()
      %c0_30 = arith.constant 0 : index
      %c0_31 = arith.constant 0 : index
      %c0_32 = arith.constant 0 : index
      %46 = vector.load %arg12[%c0_30, %c0_31, %c0_32] : memref<4x8x8xf32, #tpu.memory_space<vmem>>, vector<4x8x8xf32>
      %47 = vector.broadcast %34 : vector<4x8x1xf32> to vector<4x8x8xf32>
      %48 = arith.mulf %46, %47 : vector<4x8x8xf32>
      %49 = arith.addf %48, %45 : vector<4x8x8xf32>
      %c0_33 = arith.constant 0 : index
      %c0_34 = arith.constant 0 : index
      %c0_35 = arith.constant 0 : index
      %50 = vector.load %arg12[%c0_33, %c0_34, %c0_35] : memref<4x8x8xf32, #tpu.memory_space<vmem>>, vector<4x8x8xf32>
      tpu.vector_store %arg12[%c0_33, %c0_34, %c0_35], %49 {strides = array<i32>} : memref<4x8x8xf32, #tpu.memory_space<vmem>>, vector<4x8x8xf32>,
      %c0_36 = arith.constant 0 : index
      %c0_37 = arith.constant 0 : index
      %c0_38 = arith.constant 0 : index
      %51 = vector.load %arg11[%c0_36, %c0_37, %c0_38] : memref<4x8x1xf32, #tpu.memory_space<vmem>>, vector<4x8x1xf32>
      %52 = tpu.reciprocal %51 {approx = true} : vector<4x8x1xf32> -> vector<4x8x1xf32>
      %c0_39 = arith.constant 0 : index
      %c0_40 = arith.constant 0 : index
      %c0_41 = arith.constant 0 : index
      %53 = vector.load %arg12[%c0_39, %c0_40, %c0_41] : memref<4x8x8xf32, #tpu.memory_space<vmem>>, vector<4x8x8xf32>
      %54 = vector.broadcast %52 : vector<4x8x1xf32> to vector<4x8x8xf32>
      %55 = arith.mulf %53, %54 : vector<4x8x8xf32>
      %56 = arith.truncf %55 : vector<4x8x8xf32> to vector<4x8x8xbf16>
      %cst_42 = arith.constant 0.000000e+00 : f32
      %57 = vector.broadcast %cst_42 : f32 to vector<8x32xf32>
      %58 = vector.extract_strided_slice %56 {offsets = [0, 0, 0], sizes = [1, 8, 8], strides = [1, 1, 1]} : vector<4x8x8xbf16> to vector<1x8x8xbf16>
      %59 = vector.shape_cast %58 : vector<1x8x8xbf16> to vector<8x8xbf16>
      %c0_43 = arith.constant 0 : index
      %c0_44 = arith.constant 0 : index
      %c0_45 = arith.constant 0 : index
      %60 = vector.load %arg7[%c0_43, %c0_44, %c0_45] : memref<4x8x32xbf16, #tpu.memory_space<vmem>>, vector<1x8x32xbf16>
      %61 = vector.shape_cast %60 : vector<1x8x32xbf16> to vector<8x32xbf16>
      %cst_46 = arith.constant dense<0.000000e+00> : vector<8x32xf32>
      %62 = tpu.matmul %59, %61, %cst_46 {dimension_numbers = #tpu.dot_dimension_numbers<[1], [0], [0], [1], [0, 0, 1, 1], [], []>} : vector<8x8xbf16>, vector<8x32xbf16>, vector<8x32xf32> -> vector<8x32xf32>
      %63 = arith.addf %57, %62 : vector<8x32xf32>
      %64 = vector.extract_strided_slice %56 {offsets = [1, 0, 0], sizes = [1, 8, 8], strides = [1, 1, 1]} : vector<4x8x8xbf16> to vector<1x8x8xbf16>
      %65 = vector.shape_cast %64 : vector<1x8x8xbf16> to vector<8x8xbf16>
      %c1 = arith.constant 1 : index
      %c0_47 = arith.constant 0 : index
      %c0_48 = arith.constant 0 : index
      %66 = vector.load %arg7[%c1, %c0_47, %c0_48] : memref<4x8x32xbf16, #tpu.memory_space<vmem>>, vector<1x8x32xbf16>
      %67 = vector.shape_cast %66 : vector<1x8x32xbf16> to vector<8x32xbf16>
      %cst_49 = arith.constant dense<0.000000e+00> : vector<8x32xf32>
      %68 = tpu.matmul %65, %67, %cst_49 {dimension_numbers = #tpu.dot_dimension_numbers<[1], [0], [0], [1], [0, 0, 1, 1], [], []>} : vector<8x8xbf16>, vector<8x32xbf16>, vector<8x32xf32> -> vector<8x32xf32>
      %69 = arith.addf %63, %68 : vector<8x32xf32>
      %70 = vector.extract_strided_slice %56 {offsets = [2, 0, 0], sizes = [1, 8, 8], strides = [1, 1, 1]} : vector<4x8x8xbf16> to vector<1x8x8xbf16>
      %71 = vector.shape_cast %70 : vector<1x8x8xbf16> to vector<8x8xbf16>
      %c2 = arith.constant 2 : index
      %c0_50 = arith.constant 0 : index
      %c0_51 = arith.constant 0 : index
      %72 = vector.load %arg7[%c2, %c0_50, %c0_51] : memref<4x8x32xbf16, #tpu.memory_space<vmem>>, vector<1x8x32xbf16>
      %73 = vector.shape_cast %72 : vector<1x8x32xbf16> to vector<8x32xbf16>
      %cst_52 = arith.constant dense<0.000000e+00> : vector<8x32xf32>
      %74 = tpu.matmul %71, %73, %cst_52 {dimension_numbers = #tpu.dot_dimension_numbers<[1], [0], [0], [1], [0, 0, 1, 1], [], []>} : vector<8x8xbf16>, vector<8x32xbf16>, vector<8x32xf32> -> vector<8x32xf32>
      %75 = arith.addf %69, %74 : vector<8x32xf32>
      %76 = vector.extract_strided_slice %56 {offsets = [3, 0, 0], sizes = [1, 8, 8], strides = [1, 1, 1]} : vector<4x8x8xbf16> to vector<1x8x8xbf16>
      %77 = vector.shape_cast %76 : vector<1x8x8xbf16> to vector<8x8xbf16>
      %c3 = arith.constant 3 : index
      %c0_53 = arith.constant 0 : index
      %c0_54 = arith.constant 0 : index
      %78 = vector.load %arg7[%c3, %c0_53, %c0_54] : memref<4x8x32xbf16, #tpu.memory_space<vmem>>, vector<1x8x32xbf16>
      %79 = vector.shape_cast %78 : vector<1x8x32xbf16> to vector<8x32xbf16>
      %cst_55 = arith.constant dense<0.000000e+00> : vector<8x32xf32>
      %80 = tpu.matmul %77, %79, %cst_55 {dimension_numbers = #tpu.dot_dimension_numbers<[1], [0], [0], [1], [0, 0, 1, 1], [], []>} : vector<8x8xbf16>, vector<8x32xbf16>, vector<8x32xf32> -> vector<8x32xf32>
      %81 = arith.addf %75, %80 : vector<8x32xf32>
      %c0_56 = arith.constant 0 : index
      %c0_57 = arith.constant 0 : index
      %82 = vector.load %arg8[%c0_56, %c0_57] : memref<1x32xf32, #tpu.memory_space<vmem>>, vector<1x32xf32>
      %83 = vector.broadcast %82 : vector<1x32xf32> to vector<8x32xf32>
      %84 = arith.addf %81, %83 : vector<8x32xf32>
      %c0_58 = arith.constant 0 : index
      %c0_59 = arith.constant 0 : index
      %c0_60 = arith.constant 0 : index
      %85 = vector.load %arg9[%c0_58, %c0_59, %c0_60] : memref<1x8x32xf32, #tpu.memory_space<vmem>>, vector<1x8x32xf32>
      %86 = vector.shape_cast %85 : vector<1x8x32xf32> to vector<8x32xf32>
      %87 = vector.shape_cast %84 : vector<8x32xf32> to vector<1x8x32xf32>
      tpu.vector_store %arg9[%c0_58, %c0_59, %c0_60], %87 {strides = array<i32>} : memref<1x8x32xf32, #tpu.memory_space<vmem>>, vector<1x8x32xf32>,
    } else {
    }
    return
  }
  func.func @transform_0(%arg0: i32, %arg1: i32, %arg2: memref<1xi32, #tpu.memory_space<smem>>, %arg3: memref<1xi32, #tpu.memory_space<smem>>) -> (i32, i32, i32, i32) {
    %0 = arith.index_cast %arg1 : i32 to index
    %1 = memref.load %arg2[%0] : memref<1xi32, #tpu.memory_space<smem>>
    %c0_i32 = arith.constant 0 : i32
    %c0_i32_0 = arith.constant 0 : i32
    %c0_i32_1 = arith.constant 0 : i32
    return %arg0, %c0_i32, %1, %c0_i32_0 : i32, i32, i32, i32
  }
  func.func @transform_1(%arg0: i32, %arg1: i32, %arg2: memref<1xi32, #tpu.memory_space<smem>>, %arg3: memref<1xi32, #tpu.memory_space<smem>>) -> (i32, i32, i32, i32) {
    %0 = arith.index_cast %arg1 : i32 to index
    %1 = memref.load %arg3[%0] : memref<1xi32, #tpu.memory_space<smem>>
    %c0_i32 = arith.constant 0 : i32
    %c0_i32_0 = arith.constant 0 : i32
    %c0_i32_1 = arith.constant 0 : i32
    return %arg0, %c0_i32, %1, %c0_i32_0 : i32, i32, i32, i32
  }
  func.func @transform_2(%arg0: i32, %arg1: i32, %arg2: memref<1xi32, #tpu.memory_space<smem>>, %arg3: memref<1xi32, #tpu.memory_space<smem>>) -> (i32, i32, i32, i32) {
    %0 = arith.index_cast %arg1 : i32 to index
    %1 = memref.load %arg3[%0] : memref<1xi32, #tpu.memory_space<smem>>
    %c0_i32 = arith.constant 0 : i32
    %c0_i32_0 = arith.constant 0 : i32
    %c0_i32_1 = arith.constant 0 : i32
    return %arg0, %c0_i32, %1, %c0_i32_0 : i32, i32, i32, i32
  }
  func.func @transform_3(%arg0: i32, %arg1: i32, %arg2: memref<1xi32, #tpu.memory_space<smem>>, %arg3: memref<1xi32, #tpu.memory_space<smem>>) -> (i32, i32, i32) {
    %c0_i32 = arith.constant 0 : i32
    %c0_i32_0 = arith.constant 0 : i32
    %c0_i32_1 = arith.constant 0 : i32
    %c0_i32_2 = arith.constant 0 : i32
    return %c0_i32, %c0_i32_0, %c0_i32_1 : i32, i32, i32
  }
  func.func @transform_4(%arg0: i32, %arg1: i32, %arg2: memref<1xi32, #tpu.memory_space<smem>>, %arg3: memref<1xi32, #tpu.memory_space<smem>>) -> (i32, i32) {
    %c0_i32 = arith.constant 0 : i32
    %c0_i32_0 = arith.constant 0 : i32
    %c0_i32_1 = arith.constant 0 : i32
    return %c0_i32, %c0_i32_0 : i32, i32
  }
  func.func @transform_5(%arg0: i32, %arg1: i32, %arg2: memref<1xi32, #tpu.memory_space<smem>>, %arg3: memref<1xi32, #tpu.memory_space<smem>>) -> (i32, i32, i32) {
    %0 = arith.index_cast %arg1 : i32 to index
    %1 = memref.load %arg2[%0] : memref<1xi32, #tpu.memory_space<smem>>
    %c0_i32 = arith.constant 0 : i32
    %c0_i32_0 = arith.constant 0 : i32
    return %arg0, %1, %c0_i32 : i32, i32, i32
  }
}

</mosaic_0001>

<bundles_post_ra>
// kernel: multi_head_attention.2
= control target key start
LH: loop header
LB: loop body
LE: loop exit
PB: predicated region body
PF: predicated region fallthrough
CT: control target
= control target key end

     0   :  { %s712_s15 = smov 0   ;;  %s714_s16 = smov 0   ;;  %s780_s0 = inlined_call_operand.vmem [shape: bf16[2,8,32], index: 0, kind: input, shape index: {}]   ;;  %s781_s1 = inlined_call_operand.vmem [shape: bf16[32,96], index: 1, kind: input, shape index: {}]   ;;  %s782_s2 = inlined_call_operand.vmem [shape: bf16[2,4,8,8], index: 2, kind: output, shape index: {0}]   ;;  %s783_s3 = inlined_call_operand.vmem [shape: bf16[2,4,8,8], index: 3, kind: output, shape index: {1}]   ;;  %s784_s4 = inlined_call_operand.vmem [shape: bf16[2,4,8,8], index: 4, kind: output, shape index: {2}]  }
   0x1   :  { %s716_s17 = smov 0  }
   0x2 LB: > { %s27_s18 = sadd.s32 1, %s668_s16  ;;  %p571_p0 = scmp.ge.s32.totalorder %s672_s17, 1  ;;  %s672_s17 = sphi %s716_s17, %s15_s17   ;;  %s668_s16 = sphi %s714_s16, %s786_s16   ;;  %s664_s15 = sphi %s712_s15, %s785_s15  }
   0x3   : > { %p29_p1 = scmp.ge.s32.totalorder %s27_s18, 2  ;;  %p189_p2 = scmp.lt.s32.totalorder %s672_s17, 3 }
   0x5   : > { %s788_s18 = smov (%p29_p1, %s27_s18), 0  ;;  %p190_p3 = pnand %p571_p0, %p189_p2 }
   0x6   : > { %p236_p4 = scmp.lt.s32.totalorder (!%p190_p3), %s664_s15, 1  ;;  %s676_s5 = smov (!%p190_p3), 88  }
   0x7   : > { %193 = sbr.rel (%p190_p3) target bundleno = 352 (0x160), region = 28  ;;  %s677_s6 = smov (!%p190_p3), 96  }
   0x8   : > { %s678_s7 = smov (!%p190_p3), 48   ;;  %s679_s8 = smov (!%p190_p3), 64  }
   0x9   : > { %s680_s9 = smov (!%p190_p3), 56   ;;  %s681_s10 = smov (!%p190_p3), 120  }
   0xa   : > { %s682_s11 = smov (!%p190_p3), 80   ;;  %s683_s12 = smov (!%p190_p3), 112  }
   0xb   : > { %s684_s13 = smov (!%p190_p3), 104   ;;  %s685_s14 = smov (!%p190_p3), 72  }
   0xc   : > { %v648_v0 = vld [vmem:[%s781_s1 + $0x8] sm:$0xff]   ;;  %v674_v1 = vmov 0.0   ;;  %v649_v2 = vld [vmem:[%s781_s1] sm:$0xff]   ;;  %vm675_vm0 = vmmov 0   ;;  %s790_s15 = smov (!%p236_p4, %s664_s15), 1  ;;  %vm285_vm1 = vcmask 261120  }
   0xd   : > { %603 = vmatprep.subr.bf16.mxu0 %v674_v1  ;;  %607 = vmatprep.mubr.msk.bf16.mxu0 %vm675_vm0, %v674_v1  ;;  %s572_s23 = sshll.u32 %s790_s15, 2  ;;  %s739_s27 = sshll.u32 %s790_s15, 4  ;;  %vm331_vm2 = vcmask 60416  }
   0xe   : > { %604 = vmatpush3.bf16.msra.mxu0 %v648_v0  ;;  %s242_s26 = scalar_lea.vmem %s780_s0, %s572_s23  ;;  %s745_s30 = scalar_lea.vmem %s782_s2, %s739_s27 }
   0xf   : > { %605 = vmatprep.subr.bf16.mxu0 %v674_v1  ;;  %v268_v3 = vld [vmem:[%s242_s26] sm:$0xf]  ;;  %s686_s15 = smov 40   ;;  %s258_s21 = scalar_lea.vmem %s783_s3, %s739_s27 }
  0x10   : > { %s266_s24 = scalar_lea.vmem %s784_s4, %s739_s27 }
  0x12   : > { %606 = vmatpush3.bf16.msra.mxu0 %v649_v2 }
  0x15   : > { %608 = vmatmul.mubr.msk.bf16.vlgmr.msra.gmra.mxu0 %vm285_vm1, %v268_v3 }
  0xd5   : > { %v323_v4 = vpop.f32.mrf.mxu0 }
  0xd6   : > { %v329_v5 = vmul.f32 0.35355338, %v323_v4  ;;  %v598_v6 = vpack.c.bf16 %v323_v4, %v323_v4 }
  0xd7   : > { %v609_v7 = vpop.f32.mrf.mxu0 }
  0xd8   : > { %v330_v8 = vpack.c.bf16 %v329_v5, %v329_v5  ;;  %353 = vrot.lane.b32.xlu1 %v598_v6, %s676_s5  ;;  %337 = vrot.lane.b32.xlu0 %v598_v6, %s677_s6 }
  0xd9   : > { %v326_v9 = vpop.f32.mrf.mxu0 }
  0xda   : > { %332 = vst.msk [vmem:[%s745_s30] sm:$0xf] %vm331_vm2, %v330_v8 }
  0xdb   : > { %v610_v10 = vpop.f32.mrf.mxu0 }
  0xdc   : > { %373 = vrot.lane.b32.xlu1 %v598_v6, %s678_s7  ;;  %341 = vrot.lane.b32.xlu0 %v598_v6, %s679_s8 }
  0xe0   : > { %358 = vrot.lane.b32.xlu0 %v598_v6, %s680_s9  ;;  %348 = vrot.lane.b32.xlu1 %v330_v8, %s681_s10 }
  0xe4   : > { %368 = vrot.lane.b32.xlu0 %v598_v6, %s682_s11  ;;  %363 = vrot.lane.b32.xlu1 %v330_v8, %s683_s12 }
  0xe8   : > { %378 = vrot.lane.b32.xlu0 %v330_v8, %s684_s13  ;;  %383 = vrot.lane.b32.xlu1 %v598_v6, %s685_s14 }
  0xec   : > { %388 = vrot.lane.b32.xlu0 %v598_v6, %s686_s15 }
 0x14a   : > { %v354_v11 = vpop.permute.xlu1 %353  ;;  %v338_v12 = vpop.permute.xlu0 %337 }
 0x14b   : > { %585 = vst.msk [vmem:[%s258_s21 + $0x4] sm:$0xf] %vm331_vm2, %v354_v11  ;;  %340 = vst.msk [vmem:[%s258_s21] sm:$0xf] %vm331_vm2, %v338_v12 }
 0x14e   : > { %v374_v13 = vpop.permute.xlu1 %373  ;;  %v342_v14 = vpop.permute.xlu0 %341 }
 0x14f   : > { %589 = vst.msk [vmem:[%s266_s24 + $0x8] sm:$0xf] %vm331_vm2, %v374_v13  ;;  %344 = vst.msk [vmem:[%s266_s24] sm:$0xf] %vm331_vm2, %v342_v14 }
 0x152   : > { %v359_v15 = vpop.permute.xlu0 %358  ;;  %v349_v16 = vpop.permute.xlu1 %348 }
 0x153   : > { %586 = vst.msk [vmem:[%s266_s24 + $0x4] sm:$0xf] %vm331_vm2, %v359_v15  ;;  %584 = vst.msk [vmem:[%s745_s30 + $0x4] sm:$0xf] %vm331_vm2, %v349_v16 }
 0x156   : > { %v369_v17 = vpop.permute.xlu0 %368  ;;  %v364_v18 = vpop.permute.xlu1 %363 }
 0x157   : > { %588 = vst.msk [vmem:[%s258_s21 + $0x8] sm:$0xf] %vm331_vm2, %v369_v17  ;;  %587 = vst.msk [vmem:[%s745_s30 + $0x8] sm:$0xf] %vm331_vm2, %v364_v18 }
 0x15a   : > { %v379_v19 = vpop.permute.xlu0 %378  ;;  %v384_v20 = vpop.permute.xlu1 %383 }
 0x15b   : > { %590 = vst.msk [vmem:[%s745_s30 + $0xc] sm:$0xf] %vm331_vm2, %v379_v19  ;;  %591 = vst.msk [vmem:[%s258_s21 + $0xc] sm:$0xf] %vm331_vm2, %v384_v20 }
 0x15e   : > { %v389_v21 = vpop.permute.xlu0 %388 }
 0x15f   : > { %592 = vst.msk [vmem:[%s266_s24 + $0xc] sm:$0xf] %vm331_vm2, %v389_v21 }
 0x160 PF: > { %s15_s17 = sadd.s32 1, %s672_s17   ;;  %s785_s15 = smov %s668_s16 }
 0x161   : > { %p12_p5 = scmp.ge.s32.totalorder %s15_s17, 4   ;;  %s786_s16 = smov %s788_s18 }
 0x163   :  { %14 = sbr.rel (!%p12_p5) target bundleno = 2 (0x2), region = 91 }

// kernel: multi_head_attention.3
= control target key start
LH: loop header
LB: loop body
LE: loop exit
PB: predicated region body
PF: predicated region fallthrough
CT: control target
= control target key end

     0   :  { %s2631_s0 = inlined_call_operand.<no memory space> [shape: s32[1], index: 0, kind: input, shape index: {}, may-alias: {0,1}]   ;;  %s2632_s1 = inlined_call_operand.<no memory space> [shape: s32[1], index: 1, kind: input, shape index: {}, may-alias: {0,1}]   ;;  %s2633_s2 = inlined_call_operand.vmem [shape: bf16[2,4,8,8], index: 2, kind: input, shape index: {}]   ;;  %s2634_s3 = inlined_call_operand.vmem [shape: bf16[2,4,8,8], index: 3, kind: input, shape index: {}]   ;;  %s2635_s4 = inlined_call_operand.vmem [shape: bf16[2,4,8,8], index: 4, kind: input, shape index: {}]   ;;  %s2636_s5 = inlined_call_operand.vmem [shape: bf16[4,8,32], index: 5, kind: input, shape index: {}]   ;;  %s2637_s6 = inlined_call_operand.vmem [shape: f32[1,32], index: 6, kind: input, shape index: {}]   ;;  %s2638_s7 = inlined_call_operand.hbm [shape: f32[2,8,32], index: 7, kind: output, shape index: {}]  }
   0x1   :  { %12 = sst [smem:[#allocation6]] %s2631_s0 }
   0x2   :  { %13 = sst [smem:[#allocation7]] %s2632_s1 }
   0x3   :  { %14 = vsyncpa [#allocation9], 0 }
   0x4   :  { %16 = vsyncpa [#allocation9 + $0x1], 0  ;;  %s2228_s28 = smov 0   ;;  %s2230_s29 = smov 0  }
   0x5   :  { %s2232_s30 = smov 0   ;;  %s2234_s8 = smov 0  }
   0x6   :  { %s2236_s9 = smov 0   ;;  %s2238_s10 = smov 0  }
   0x7 LB: > { %2643 = sst [smem:[#allocation11_spill]] %s2159_s30  ;;  %s1785_s0 = sadd.s32 4294967295, %s2171_s10   ;;  %s2171_s10 = sphi %s2238_s10, %s22_s10   ;;  %s2167_s9 = sphi %s2236_s9, %s2653_s9   ;;  %s2163_s8 = sphi %s2234_s8, %s2652_s8   ;;  %s2159_s30 = sphi %s2232_s30, %s2651_s30   ;;  %s2155_s29 = sphi %s2230_s29, %s2655_s29   ;;  %s2151_s28 = sphi %s2228_s28, %s2654_s28  }
   0x8   : > { %2644 = sst [smem:[#allocation12_spill]] %s2167_s9  ;;  %s1786_s1 = sadd.s32 4294967294, %s2171_s10  }
   0x9   : > { %s34_s11 = sadd.s32 1, %s2167_s9  ;;  %s177_s12 = sadd.s32 1, %s2159_s30 }
   0xa   : > { %p36_p0 = scmp.ge.s32.totalorder %s34_s11, 2  ;;  %p187_p1 = scmp.ne.s32.totalorder %s2159_s30, %s2155_s29 }
   0xb   : > { %p188_p2 = scmp.eq.s32.totalorder %s1785_s0, 1  ;;  %p193_p4 = scmp.ne.s32.totalorder %s2155_s29, %s2151_s28 }
   0xc   : > { %s2657_s11 = smov (%p36_p0, %s34_s11), 0  ;;  %p194_p5 = scmp.eq.s32.totalorder %s1786_s1, 1 }
   0xd   : > { %2645 = sst [smem:[#allocation13_spill]] %s2657_s11  ;;  %p2266_p3 = por %p188_p2, %p187_p1 }
   0xe   : > { %s172_s14 = ssub.s32 %s2167_s9, %s2657_s11  ;;  %p1789_p6 = scmp.ge.s32.totalorder %s2171_s10, 1 }
   0xf   : > { %p2275_p7 = por %p194_p5, %p193_p4  ;;  %p175_p8 = scmp.eq.s32.totalorder %s172_s14, 0 }
  0x10   : > { %p257_p9 = scmp.lt.s32.totalorder %s2171_s10, 3 }
  0x11   : > { %s2281_s16 = scalar_select %p175_p8, %s2159_s30, %s177_s12  }
  0x12   : > { %p258_p10 = pnand %p1789_p6, %p257_p9 }
  0x13   : > { %2648 = sst [smem:[#allocation14_spill]] %s2281_s16  ;;  %s2639_s17 = sand.u32 (!%p258_p10), 1, %s2155_s29  }
  0x14   : > { %261 = sbr.rel (%p258_p10) target bundleno = 1772 (0x6ec), region = 40  ;;  %s2284_s18 = sld [smem:[#allocation6]] (!%p258_p10) }
  0x15   : > { %s2288_s19 = sshll.u32 (!%p258_p10), %s2639_s17, 3  ;;  %p308_p11 = scmp.lt.s32.totalorder (!%p258_p10), %s2163_s8, 1 }
  0x16   : > { %s2291_s20 = sld [smem:[#allocation7]] (!%p258_p10) }
  0x19   : > { %s309_s21 = scalar_select %p308_p11, %s2163_s8, 1 }
  0x1a   : > { %p310_p12 = scmp.lt.s32.totalorder %s2284_s18, 0 }
  0x1b   : > { %s1791_s22 = sshll.u32 %s309_s21, 2 }
  0x1c   : > { %s311_s23 = scalar_select %p310_p12, %s2284_s18, 0 }
  0x1d   : > { %p320_p13 = scmp.lt.s32.totalorder %s2291_s20, 0  ;;  %p1797_p0 = scmp.ne.s32.totalorder %s2291_s20, 0 }
  0x1e   : > { %s313_s24 = sadd.s32 %s1791_s22, %s311_s23  ;;  %s306_s23 = scalar_lea.vmem [#allocation8], %s2288_s19 }
  0x1f   : > { %s1792_s25 = sshll.u32 %s313_s24, 2 }
  0x20   : > { %s2300_s0 = scalar_lea.vmem %s2633_s2, %s1792_s25 }
  0x21   : > { %s321_s1 = scalar_select %p320_p13, %s2291_s20, 0 }
  0x22   : > { %344 = sbr.rel (%p1797_p0) target bundleno = 46 (0x2e), region = 44 }
  0x23   : > { %s323_s12 = sadd.s32 %s1791_s22, %s321_s1 }
  0x24   : > { %s1794_s14 = sshll.u32 %s323_s12, 2 }
  0x25   : > { %s2306_s9 = scalar_lea.vmem %s2634_s3, %s1794_s14  ;;  %s2311_s21 = scalar_lea.vmem %s2635_s4, %s1794_s14 }
  0x27   : > { %vm345_vm0 = vcmask 7168   ;;  %vm354_vm1 = vcmask 64512   ;;  %v2173_v0 = vmov -inf   ;;  %v2174_v1 = vmov 0.0  }
  0x28   : > { %346 = vst.msk [vmem:[#allocation2] sm:$0xff] %vm345_vm0, %v2173_v0  ;;  %347 = vst.msk [vmem:[#allocation2 + $0x8] sm:$0xff] %vm345_vm0, %v2173_v0 }
  0x29   : > { %348 = vst.msk [vmem:[#allocation2 + $0x10] sm:$0xff] %vm345_vm0, %v2173_v0  ;;  %349 = vst.msk [vmem:[#allocation2 + $0x18] sm:$0xff] %vm345_vm0, %v2173_v0 }
  0x2a   : > { %350 = vst.msk [vmem:[#allocation3] sm:$0xff] %vm345_vm0, %v2174_v1  ;;  %351 = vst.msk [vmem:[#allocation3 + $0x8] sm:$0xff] %vm345_vm0, %v2174_v1 }
  0x2b   : > { %352 = vst.msk [vmem:[#allocation3 + $0x10] sm:$0xff] %vm345_vm0, %v2174_v1  ;;  %353 = vst.msk [vmem:[#allocation3 + $0x18] sm:$0xff] %vm345_vm0, %v2174_v1 }
  0x2c   : > { %355 = vst.msk [vmem:[#allocation4] sm:$0xff] %vm354_vm1, %v2174_v1  ;;  %356 = vst.msk [vmem:[#allocation4 + $0x8] sm:$0xff] %vm354_vm1, %v2174_v1 }
  0x2d   : > { %357 = vst.msk [vmem:[#allocation4 + $0x10] sm:$0xff] %vm354_vm1, %v2174_v1  ;;  %358 = vst.msk [vmem:[#allocation4 + $0x18] sm:$0xff] %vm354_vm1, %v2174_v1 }
  0x2e PF: > { %p1798_p1 = scmp.ge.s32.totalorder %s2291_s20, %s2284_s18 }
  0x30   : > { %362 = sbr.rel (%p1798_p1) target bundleno = 751 (0x2ef), region = 48 }
  0x35   : > { %v367_v2 = vld [vmem:[%s2306_s9] sm:$0xf]  ;;  %vm375_vm2 = vcmask 64512   ;;  %v368_v3 = vld [vmem:[%s2306_s9 + $0x4] sm:$0xf]  ;;  %v2175_v4 = vmov 0.0  }
  0x36   : > { %1868 = vmatprep.subr.bf16.mxu0 %v2175_v4  ;;  %1874 = vmatprep.subr.bf16.mxu1 %v2175_v4  ;;  %v380_v5 = vsel %vm375_vm2, %v367_v2, 0  ;;  %v426_v6 = vsel %vm375_vm2, %v368_v3, 0  ;;  %vm2176_vm3 = vmmov 0   ;;  %v369_v7 = vld [vmem:[%s2306_s9 + $0x8] sm:$0xf]  ;;  %v2177_v33 = vmov 0  }
  0x37   : > { %1869 = vmatpush3.bf16.xpose.msra.mxu0 %v380_v5  ;;  %1875 = vmatpush3.bf16.xpose.msra.mxu1 %v426_v6  ;;  %v370_v8 = vld [vmem:[%s2306_s9 + $0xc] sm:$0xf]  ;;  %v363_v9 = vld [vmem:[%s2300_s0] sm:$0xf]  ;;  %v364_v10 = vld [vmem:[%s2300_s0 + $0x4] sm:$0xf] }
  0x38   : > { %1870 = vmatprep.mubr.msk.bf16.mxu0 %vm2176_vm3, %v2175_v4  ;;  %1876 = vmatprep.mubr.msk.bf16.mxu1 %vm2176_vm3, %v2175_v4  ;;  %v472_v11 = vsel %vm375_vm2, %v369_v7, 0  ;;  %v518_v12 = vsel %vm375_vm2, %v370_v8, 0  ;;  %v365_v13 = vld [vmem:[%s2300_s0 + $0x8] sm:$0xf]  ;;  %v366_v14 = vld [vmem:[%s2300_s0 + $0xc] sm:$0xf] }
  0x39   : > { %1880 = vmatprep.subr.bf16.mxu0 %v2175_v4  ;;  %1886 = vmatprep.subr.bf16.mxu1 %v2175_v4  ;;  %v560_v36 = vld [vmem:[#allocation2] sm:$0xff]  ;;  %vm648_vm4 = vcmask 7168   ;;  %v2367_v39 = vld [vmem:[#allocation2 + $0x8] sm:$0xff]  ;;  %v562_v44 = vld [vmem:[#allocation2 + $0x10] sm:$0xff]  ;;  %vm664_vm5 = vcmask 1043456  }
  0x3a   : > { %2051 = vset.pattern.permute.xlu0 %v2177_v33  ;;  %2052 = vset.pattern.permute.xlu1 %v2177_v33  ;;  %v2378_v48 = vld [vmem:[#allocation2 + $0x18] sm:$0xff]  ;;  %v371_v52 = vld [vmem:[%s2311_s21] sm:$0xf]  ;;  %v372_v55 = vld [vmem:[%s2311_s21 + $0x4] sm:$0xf] }
  0x3b   : > { %v666_v54 = vsel %vm664_vm5, %v371_v52, 0  ;;  %v712_v56 = vsel %vm664_vm5, %v372_v55, 0  ;;  %v373_v7 = vld [vmem:[%s2311_s21 + $0x8] sm:$0xf] }
  0x3e   : > { %1871 = vmatmul.mubr.msk.bf16.vlgmr.msra.gmra.mxu0 %vm375_vm2, %v363_v9  ;;  %1877 = vmatmul.mubr.msk.bf16.vlgmr.msra.gmra.mxu1 %vm375_vm2, %v364_v10 }
  0x3f   : > { %1881 = vmatpush3.bf16.xpose.msra.mxu0 %v472_v11  ;;  %1887 = vmatpush3.bf16.xpose.msra.mxu1 %v518_v12  ;;  %v758_v12 = vsel %vm664_vm5, %v373_v7, 0 }
  0x40   : > { %1882 = vmatprep.mubr.msk.bf16.mxu0 %vm2176_vm3, %v2175_v4  ;;  %1888 = vmatprep.mubr.msk.bf16.mxu1 %vm2176_vm3, %v2175_v4 }
  0x41   : > { %1892 = vmatprep.subr.bf16.mxu0 %v2175_v4  ;;  %1898 = vmatprep.subr.bf16.mxu1 %v2175_v4 }
  0x46   : > { %1883 = vmatmul.mubr.msk.bf16.vlgmr.msra.gmra.mxu0 %vm375_vm2, %v365_v13  ;;  %1889 = vmatmul.mubr.msk.bf16.vlgmr.msra.gmra.mxu1 %vm375_vm2, %v366_v14  ;;  %v374_v13 = vld [vmem:[%s2311_s21 + $0xc] sm:$0xf] }
  0x47   : > { %1894 = vmatprep.mubr.msk.bf16.mxu0 %vm2176_vm3, %v2175_v4  ;;  %1900 = vmatprep.mubr.msk.bf16.mxu1 %vm2176_vm3, %v2175_v4 }
  0x48   : > { %1893 = vmatpush3.bf16.msra.mxu0 %v666_v54  ;;  %1899 = vmatpush3.bf16.msra.mxu1 %v712_v56  ;;  %v848_v54 = vld [vmem:[#allocation4 + $0x10] sm:$0xff] }
  0x49   : > { %1904 = vmatprep.subr.bf16.mxu0 %v2175_v4  ;;  %1910 = vmatprep.subr.bf16.mxu1 %v2175_v4 }
  0xfe   : > { %v2351_v15 = vpop.f32.mrf.mxu0  ;;  %v2353_v16 = vpop.f32.mrf.mxu1 }
  0xff   : > { %v568_v17 = vsel %vm375_vm2, %v2351_v15, -inf  ;;  %v571_v20 = vsel %vm375_vm2, %v2353_v16, -inf }
 0x100   : > { %v1878_v18 = vpop.f32.mrf.mxu1  ;;  %569 = vmax.xlane.f32.xlu0 %v568_v17  ;;  %v1872_v19 = vpop.f32.mrf.mxu0  ;;  %v804_v17 = vsel %vm664_vm5, %v374_v13, 0 }
 0x102   : > { %v419_v21 = vpop.f32.mrf.mxu0  ;;  %v465_v22 = vpop.f32.mrf.mxu1 }
 0x104   : > { %v1879_v23 = vpop.f32.mrf.mxu1  ;;  %572 = vmax.xlane.f32.xlu0 %v571_v20  ;;  %v1873_v24 = vpop.f32.mrf.mxu0 }
 0x106   : > { %v2359_v25 = vpop.f32.mrf.mxu0  ;;  %v2361_v26 = vpop.f32.mrf.mxu1 }
 0x107   : > { %v574_v27 = vsel %vm375_vm2, %v2359_v25, -inf  ;;  %v577_v30 = vsel %vm375_vm2, %v2361_v26, -inf }
 0x108   : > { %v1890_v28 = vpop.f32.mrf.mxu1  ;;  %575 = vmax.xlane.f32.xlu1 %v574_v27  ;;  %v1884_v29 = vpop.f32.mrf.mxu0 }
 0x109   : > { %v564_v29 = vld [vmem:[#allocation3] sm:$0xff] }
 0x10a   : > { %v511_v31 = vpop.f32.mrf.mxu0  ;;  %v557_v32 = vpop.f32.mrf.mxu1 }
 0x10b   : > { %v565_v32 = vld [vmem:[#allocation3 + $0x8] sm:$0xff] }
 0x10c   : > { %v1891_v34 = vpop.f32.mrf.mxu1  ;;  %578 = vmax.xlane.f32.xlu1 %v577_v30  ;;  %v1885_v35 = vpop.f32.mrf.mxu0 }
 0x189   : > { %v570_v37 = vpop.xlane.xlu0 %569 }
 0x18a   : > { %v580_v38 = vmax.f32 %v560_v36, %v570_v37 }
 0x18c   : > { %v584_v40 = vsub.f32 %v560_v36, %v580_v38  ;;  %653 = vst.msk [vmem:[#allocation2] sm:$0xff] %vm648_vm4, %v580_v38  ;;  %598 = vperm.xlu0 %2051, %v580_v38   ;;  %v566_v38 = vld [vmem:[#allocation3 + $0x10] sm:$0xff] }
 0x18d   : > { %v573_v41 = vpop.xlane.xlu0 %572 }
 0x18e   : > { %v588_v42 = vmul.f32 1.442695, %v584_v40  ;;  %v2371_v43 = vmax.f32 %v2367_v39, %v573_v41 }
 0x190   : > { %2053 = vpow2.f32 %v588_v42  ;;  %v585_v45 = vsub.f32 %v2367_v39, %v2371_v43  ;;  %654 = vst.msk [vmem:[#allocation2 + $0x8] sm:$0xff] %vm648_vm4, %v2371_v43  ;;  %603 = vperm.xlu1 %2052, %v2371_v43   ;;  %v846_v39 = vld [vmem:[#allocation4] sm:$0xff]  ;;  %v567_v42 = vld [vmem:[#allocation3 + $0x18] sm:$0xff] }
 0x191   : > { %v576_v46 = vpop.xlane.xlu1 %575 }
 0x192   : > { %v582_v47 = vmax.f32 %v562_v44, %v576_v46  ;;  %v590_v20 = vmul.f32 1.442695, %v585_v45  ;;  %v847_v45 = vld [vmem:[#allocation4 + $0x8] sm:$0xff] }
 0x194   : > { %v586_v49 = vsub.f32 %v562_v44, %v582_v47  ;;  %655 = vst.msk [vmem:[#allocation2 + $0x10] sm:$0xff] %vm648_vm4, %v582_v47  ;;  %608 = vperm.xlu1 %2052, %v582_v47  }
 0x195   : > { %v579_v50 = vpop.xlane.xlu1 %578 }
 0x196   : > { %v2382_v51 = vmax.f32 %v2378_v48, %v579_v50  ;;  %v592_v9 = vmul.f32 1.442695, %v586_v49 }
 0x198   : > { %v587_v53 = vsub.f32 %v2378_v48, %v2382_v51  ;;  %656 = vst.msk [vmem:[#allocation2 + $0x18] sm:$0xff] %vm648_vm4, %v2382_v51  ;;  %613 = vperm.xlu1 %2052, %v2382_v51  }
 0x19d   : > { %v2054_v57 = vpop.eup %2053 }
 0x19e   : > { %852 = vperm.xlu1 %2052, %v2054_v57   ;;  %v628_v30 = vmul.f32 %v2054_v57, %v564_v29 }
 0x207   : > { %v599_v58 = vpop.permute.xlu0 %598 }
 0x208   : > { %v616_v59 = vsub.f32 %v2351_v15, %v599_v58 }
 0x20a   : > { %v620_v60 = vmul.f32 1.442695, %v616_v59 }
 0x20b   : > { %v604_v61 = vpop.permute.xlu1 %603 }
 0x20c   : > { %2055 = vpow2.f32 %v620_v60  ;;  %v617_v62 = vsub.f32 %v2353_v16, %v604_v61 }
 0x20e   : > { %v622_v63 = vmul.f32 1.442695, %v617_v62  ;;  %v849_v62 = vld [vmem:[#allocation4 + $0x18] sm:$0xff] }
 0x20f   : > { %v609_v0 = vpop.permute.xlu1 %608 }
 0x210   : > { %2057 = vpow2.f32 %v622_v63  ;;  %v618_v1 = vsub.f32 %v2359_v25, %v609_v0 }
 0x212   : > { %v624_v2 = vmul.f32 1.442695, %v618_v1 }
 0x213   : > { %v614_v3 = vpop.permute.xlu1 %613 }
 0x214   : > { %2059 = vpow2.f32 %v624_v2  ;;  %v619_v5 = vsub.f32 %v2361_v26, %v614_v3 }
 0x216   : > { %v626_v6 = vmul.f32 1.442695, %v619_v5 }
 0x218   : > { %2061 = vpow2.f32 %v626_v6 }
 0x219   : > { %v2056_v8 = vpop.eup %2055  ;;  %2063 = vpow2.f32 %v592_v9  ;;  %v853_v28 = vpop.permute.xlu1 %852 }
 0x21a   : > { %v632_v10 = vsel %vm375_vm2, %v2056_v8, 0.0  ;;  %v657_v11 = vpack.c.bf16 %v2056_v8, %v2056_v8  ;;  %2065 = vpow2.f32 %v590_v20  ;;  %v870_v44 = vmul.f32 %v853_v28, %v846_v39 }
 0x21b   : > { %633 = vadd.xlane.f32.xlu1 %v632_v10 }
 0x21c   : > { %1895 = vmatmul.mubr.msk.bf16.vlgmr.msra.gmra.mxu0 %vm375_vm2, %v657_v11 }
 0x21d   : > { %v2058_v14 = vpop.eup %2057  ;;  %1905 = vmatpush3.bf16.msra.mxu0 %v758_v12  ;;  %1906 = vmatprep.mubr.msk.bf16.mxu0 %vm2176_vm3, %v2175_v4 }
 0x21e   : > { %v635_v15 = vsel %vm375_vm2, %v2058_v14, 0.0  ;;  %v658_v16 = vpack.c.bf16 %v2058_v14, %v2058_v14 }
 0x21f   : > { %636 = vadd.xlane.f32.xlu0 %v635_v15 }
 0x220   : > { %1901 = vmatmul.mubr.msk.bf16.vlgmr.msra.gmra.mxu1 %vm375_vm2, %v658_v16 }
 0x221   : > { %v2060_v18 = vpop.eup %2059  ;;  %1911 = vmatpush3.bf16.msra.mxu1 %v804_v17  ;;  %1912 = vmatprep.mubr.msk.bf16.mxu1 %vm2176_vm3, %v2175_v4  ;;  %v594_v4 = vmul.f32 1.442695, %v587_v53 }
 0x222   : > { %v659_v19 = vpack.c.bf16 %v2060_v18, %v2060_v18  ;;  %v638_v25 = vsel %vm375_vm2, %v2060_v18, 0.0 }
 0x223   : > { %2067 = vpow2.f32 %v594_v4 }
 0x224   : > { %1907 = vmatmul.mubr.msk.bf16.vlgmr.msra.gmra.mxu0 %vm375_vm2, %v659_v19 }
 0x225   : > { %v2062_v21 = vpop.eup %2061 }
 0x226   : > { %v660_v22 = vpack.c.bf16 %v2062_v21, %v2062_v21  ;;  %v2064_v23 = vpop.eup %2063  ;;  %v641_v26 = vsel %vm375_vm2, %v2062_v21, 0.0 }
 0x227   : > { %v2066_v24 = vpop.eup %2065  ;;  %v630_v40 = vmul.f32 %v2064_v23, %v566_v38 }
 0x228   : > { %1913 = vmatmul.mubr.msk.bf16.vlgmr.msra.gmra.mxu1 %vm375_vm2, %v660_v22  ;;  %v629_v34 = vmul.f32 %v2066_v24, %v565_v32 }
 0x22c   : > { %862 = vperm.xlu1 %2052, %v2064_v23  }
 0x230   : > { %v2068_v27 = vpop.eup %2067 }
 0x231   : > { %v631_v48 = vmul.f32 %v2068_v27, %v567_v42 }
 0x235   : > { %857 = vperm.xlu0 %2051, %v2066_v24  }
 0x250   : > { %639 = vadd.xlane.f32.xlu1 %v638_v25 }
 0x254   : > { %642 = vadd.xlane.f32.xlu1 %v641_v26 }
 0x265   : > { %867 = vperm.xlu1 %2052, %v2068_v27  }
 0x2a4   : > { %v634_v31 = vpop.xlane.xlu1 %633 }
 0x2a5   : > { %v644_v33 = vadd.f32 %v634_v31, %v628_v30 }
 0x2a7   : > { %649 = vst.msk [vmem:[#allocation3] sm:$0xff] %vm648_vm4, %v644_v33 }
 0x2a8   : > { %v637_v35 = vpop.xlane.xlu0 %636  ;;  %v863_v37 = vpop.permute.xlu1 %862 }
 0x2a9   : > { %v645_v36 = vadd.f32 %v637_v35, %v629_v34  ;;  %v872_v60 = vmul.f32 %v863_v37, %v848_v54 }
 0x2ab   : > { %650 = vst.msk [vmem:[#allocation3 + $0x8] sm:$0xff] %vm648_vm4, %v645_v36 }
 0x2b0   : > { %v858_v46 = vpop.permute.xlu0 %857 }
 0x2b1   : > { %v871_v53 = vmul.f32 %v858_v46, %v847_v45 }
 0x2d9   : > { %v640_v41 = vpop.xlane.xlu1 %639 }
 0x2da   : > { %v646_v43 = vadd.f32 %v640_v41, %v630_v40 }
 0x2dc   : > { %651 = vst.msk [vmem:[#allocation3 + $0x10] sm:$0xff] %vm648_vm4, %v646_v43  ;;  %v702_v47 = vpop.f32.mrf.mxu0 }
 0x2dd   : > { %v874_v49 = vadd.f32 %v870_v44, %v702_v47  ;;  %v643_v50 = vpop.xlane.xlu1 %642 }
 0x2de   : > { %v647_v51 = vadd.f32 %v643_v50, %v631_v48  ;;  %v1896_v52 = vpop.f32.mrf.mxu0 }
 0x2df   : > { %878 = vst.msk [vmem:[#allocation4] sm:$0xff] %vm375_vm2, %v874_v49 }
 0x2e0   : > { %652 = vst.msk [vmem:[#allocation3 + $0x18] sm:$0xff] %vm648_vm4, %v647_v51  ;;  %v705_v55 = vpop.f32.mrf.mxu0  ;;  %v748_v56 = vpop.f32.mrf.mxu1 }
 0x2e1   : > { %v875_v57 = vadd.f32 %v871_v53, %v748_v56  ;;  %v868_v61 = vpop.permute.xlu1 %867 }
 0x2e2   : > { %v1897_v58 = vpop.f32.mrf.mxu0  ;;  %v1902_v59 = vpop.f32.mrf.mxu1  ;;  %v873_v5 = vmul.f32 %v868_v61, %v849_v62 }
 0x2e3   : > { %879 = vst.msk [vmem:[#allocation4 + $0x8] sm:$0xff] %vm375_vm2, %v875_v57 }
 0x2e4   : > { %v751_v63 = vpop.f32.mrf.mxu1  ;;  %v794_v0 = vpop.f32.mrf.mxu0 }
 0x2e5   : > { %v876_v1 = vadd.f32 %v872_v60, %v794_v0 }
 0x2e6   : > { %v1903_v2 = vpop.f32.mrf.mxu1  ;;  %v1908_v3 = vpop.f32.mrf.mxu0 }
 0x2e7   : > { %880 = vst.msk [vmem:[#allocation4 + $0x10] sm:$0xff] %vm375_vm2, %v876_v1 }
 0x2e8   : > { %v797_v6 = vpop.f32.mrf.mxu0  ;;  %v840_v7 = vpop.f32.mrf.mxu1 }
 0x2e9   : > { %v877_v8 = vadd.f32 %v873_v5, %v840_v7 }
 0x2ea   : > { %v1909_v9 = vpop.f32.mrf.mxu0  ;;  %v1914_v10 = vpop.f32.mrf.mxu1 }
 0x2eb   : > { %881 = vst.msk [vmem:[#allocation4 + $0x18] sm:$0xff] %vm375_vm2, %v877_v8 }
 0x2ec   : > { %v843_v11 = vpop.f32.mrf.mxu1 }
 0x2ee   : > { %v1915_v12 = vpop.f32.mrf.mxu1 }
 0x2ef PF: > { %p1807_p2 = scmp.ne.s32.totalorder %s2291_s20, %s2284_s18 }
 0x2f1   : > { %885 = sbr.rel (%p1807_p2) target bundleno = 1747 (0x6d3), region = 52 }
 0x2f6   : > { %v890_v13 = vld [vmem:[%s2306_s9] sm:$0xf]  ;;  %vm898_vm6 = vcmask 64512   ;;  %v891_v14 = vld [vmem:[%s2306_s9 + $0x4] sm:$0xf]  ;;  %v2178_v15 = vmov 0.0   ;;  %v1083_v4 = vlaneseq }
 0x2f7   : > { %1916 = vmatprep.subr.bf16.mxu0 %v2178_v15  ;;  %1922 = vmatprep.subr.bf16.mxu1 %v2178_v15  ;;  %v903_v16 = vsel %vm898_vm6, %v890_v13, 0  ;;  %v949_v17 = vsel %vm898_vm6, %v891_v14, 0  ;;  %vm2179_vm7 = vmmov 0   ;;  %v892_v18 = vld [vmem:[%s2306_s9 + $0x8] sm:$0xf]  ;;  %v2180_v52 = vmov 0  }
 0x2f8   : > { %1917 = vmatpush3.bf16.xpose.msra.mxu0 %v903_v16  ;;  %1923 = vmatpush3.bf16.xpose.msra.mxu1 %v949_v17  ;;  %v893_v19 = vld [vmem:[%s2306_s9 + $0xc] sm:$0xf]  ;;  %v886_v20 = vld [vmem:[%s2300_s0] sm:$0xf]  ;;  %v887_v21 = vld [vmem:[%s2300_s0 + $0x4] sm:$0xf] }
 0x2f9   : > { %1918 = vmatprep.mubr.msk.bf16.mxu0 %vm2179_vm7, %v2178_v15  ;;  %1924 = vmatprep.mubr.msk.bf16.mxu1 %vm2179_vm7, %v2178_v15  ;;  %v995_v22 = vsel %vm898_vm6, %v892_v18, 0  ;;  %v1041_v23 = vsel %vm898_vm6, %v893_v19, 0  ;;  %v888_v24 = vld [vmem:[%s2300_s0 + $0x8] sm:$0xf]  ;;  %v889_v25 = vld [vmem:[%s2300_s0 + $0xc] sm:$0xf] }
 0x2fa   : > { %1928 = vmatprep.subr.bf16.mxu0 %v2178_v15  ;;  %1934 = vmatprep.subr.bf16.mxu1 %v2178_v15  ;;  %v1084_v26 = vshrl.u32 %v1083_v4, 7  ;;  %v1086_v27 = vand.u32 127, %v1083_v4  ;;  %v2476_v53 = vld [vmem:[#allocation2] sm:$0xff]  ;;  %vm1182_vm9 = vcmask 7168   ;;  %v2479_v56 = vld [vmem:[#allocation2 + $0x8] sm:$0xff]  ;;  %v2486_v60 = vld [vmem:[#allocation2 + $0x10] sm:$0xff] }
 0x2fb   : > { %2069 = vset.pattern.permute.xlu0 %v2180_v52  ;;  %2070 = vset.pattern.permute.xlu1 %v2180_v52  ;;  %v2496_v0 = vld [vmem:[#allocation2 + $0x18] sm:$0xff]  ;;  %v894_v5 = vld [vmem:[%s2311_s21] sm:$0xf]  ;;  %vm1198_vm10 = vcmask 1043456   ;;  %v895_v8 = vld [vmem:[%s2311_s21 + $0x4] sm:$0xf] }
 0x2fc   : > { %vm1087_vm8 = vcmp.ge.s32.totalorder %v1084_v26, %v1086_v27  ;;  %v1200_v7 = vsel %vm1198_vm10, %v894_v5, 0  ;;  %v1246_v9 = vsel %vm1198_vm10, %v895_v8, 0  ;;  %v897_v27 = vld [vmem:[%s2311_s21 + $0xc] sm:$0xf]  ;;  %v1816_v5 = vld [vmem:[%s2636_s5 + $0x4] sm:$0xf] }
 0x2fd   : > { %vm1657_vm11 = vcmask 261120  }
 0x2ff   : > { %1919 = vmatmul.mubr.msk.bf16.vlgmr.msra.gmra.mxu0 %vm898_vm6, %v886_v20  ;;  %1925 = vmatmul.mubr.msk.bf16.vlgmr.msra.gmra.mxu1 %vm898_vm6, %v887_v21 }
 0x300   : > { %1929 = vmatpush3.bf16.xpose.msra.mxu0 %v995_v22  ;;  %1935 = vmatpush3.bf16.xpose.msra.mxu1 %v1041_v23  ;;  %v896_v23 = vld [vmem:[%s2311_s21 + $0x8] sm:$0xf] }
 0x301   : > { %1930 = vmatprep.mubr.msk.bf16.mxu0 %vm2179_vm7, %v2178_v15  ;;  %1936 = vmatprep.mubr.msk.bf16.mxu1 %vm2179_vm7, %v2178_v15  ;;  %v1292_v26 = vsel %vm1198_vm10, %v896_v23, 0 }
 0x302   : > { %1940 = vmatprep.subr.bf16.mxu0 %v2178_v15  ;;  %1946 = vmatprep.subr.bf16.mxu1 %v2178_v15 }
 0x307   : > { %1931 = vmatmul.mubr.msk.bf16.vlgmr.msra.gmra.mxu0 %vm898_vm6, %v888_v24  ;;  %1937 = vmatmul.mubr.msk.bf16.vlgmr.msra.gmra.mxu1 %vm898_vm6, %v889_v25 }
 0x308   : > { %1942 = vmatprep.mubr.msk.bf16.mxu0 %vm2179_vm7, %v2178_v15  ;;  %1948 = vmatprep.mubr.msk.bf16.mxu1 %vm2179_vm7, %v2178_v15 }
 0x309   : > { %1941 = vmatpush3.bf16.msra.mxu0 %v1200_v7  ;;  %1947 = vmatpush3.bf16.msra.mxu1 %v1246_v9  ;;  %v1463_v7 = vsel %vm1198_vm10, %v1816_v5, 0 }
 0x30a   : > { %1952 = vmatprep.subr.bf16.mxu0 %v2178_v15  ;;  %1958 = vmatprep.subr.bf16.mxu1 %v2178_v15 }
 0x3bf   : > { %v939_v28 = vpop.f32.mrf.mxu0  ;;  %v985_v29 = vpop.f32.mrf.mxu1 }
 0x3c0   : > { %v2463_v30 = vsel %vm1087_vm8, %v939_v28, -inf  ;;  %v2466_v31 = vsel %vm1087_vm8, %v985_v29, -inf }
 0x3c1   : > { %v1920_v32 = vpop.f32.mrf.mxu0  ;;  %v1926_v33 = vpop.f32.mrf.mxu1  ;;  %v1102_v34 = vsel %vm898_vm6, %v2463_v30, -inf  ;;  %v1105_v37 = vsel %vm898_vm6, %v2466_v31, -inf }
 0x3c2   : > { %1103 = vmax.xlane.f32.xlu0 %v1102_v34 }
 0x3c3   : > { %v942_v35 = vpop.f32.mrf.mxu0  ;;  %v988_v36 = vpop.f32.mrf.mxu1 }
 0x3c5   : > { %v1921_v38 = vpop.f32.mrf.mxu0  ;;  %v1927_v39 = vpop.f32.mrf.mxu1 }
 0x3c6   : > { %1106 = vmax.xlane.f32.xlu0 %v1105_v37 }
 0x3c7   : > { %v1031_v40 = vpop.f32.mrf.mxu0  ;;  %v1077_v41 = vpop.f32.mrf.mxu1 }
 0x3c8   : > { %v1092_v42 = vsel %vm1087_vm8, %v1031_v40, -inf  ;;  %v1093_v43 = vsel %vm1087_vm8, %v1077_v41, -inf }
 0x3c9   : > { %v1932_v44 = vpop.f32.mrf.mxu0  ;;  %v1938_v45 = vpop.f32.mrf.mxu1  ;;  %v1108_v46 = vsel %vm898_vm6, %v1092_v42, -inf  ;;  %v1111_v49 = vsel %vm898_vm6, %v1093_v43, -inf }
 0x3ca   : > { %1109 = vmax.xlane.f32.xlu1 %v1108_v46  ;;  %v1098_v46 = vld [vmem:[#allocation3] sm:$0xff] }
 0x3cb   : > { %v1034_v47 = vpop.f32.mrf.mxu0  ;;  %v1080_v48 = vpop.f32.mrf.mxu1 }
 0x3cd   : > { %v1933_v50 = vpop.f32.mrf.mxu0  ;;  %v1939_v51 = vpop.f32.mrf.mxu1 }
 0x3ce   : > { %1112 = vmax.xlane.f32.xlu1 %v1111_v49  ;;  %v1099_v49 = vld [vmem:[#allocation3 + $0x8] sm:$0xff] }
 0x44b   : > { %v1104_v54 = vpop.xlane.xlu0 %1103 }
 0x44c   : > { %v1114_v55 = vmax.f32 %v2476_v53, %v1104_v54 }
 0x44e   : > { %v1118_v57 = vsub.f32 %v2476_v53, %v1114_v55  ;;  %1187 = vst.msk [vmem:[#allocation2] sm:$0xff] %vm1182_vm9, %v1114_v55  ;;  %1132 = vperm.xlu0 %2069, %v1114_v55   ;;  %v1100_v53 = vld [vmem:[#allocation3 + $0x10] sm:$0xff] }
 0x44f   : > { %v1107_v58 = vpop.xlane.xlu0 %1106 }
 0x450   : > { %v2484_v59 = vmax.f32 %v2479_v56, %v1107_v58  ;;  %v1122_v32 = vmul.f32 1.442695, %v1118_v57  ;;  %v1101_v57 = vld [vmem:[#allocation3 + $0x18] sm:$0xff] }
 0x452   : > { %v1119_v61 = vsub.f32 %v2479_v56, %v2484_v59  ;;  %1188 = vst.msk [vmem:[#allocation2 + $0x8] sm:$0xff] %vm1182_vm9, %v2484_v59  ;;  %1137 = vperm.xlu1 %2070, %v2484_v59  }
 0x453   : > { %v1110_v62 = vpop.xlane.xlu1 %1109 }
 0x454   : > { %v2494_v63 = vmax.f32 %v2486_v60, %v1110_v62  ;;  %v1124_v37 = vmul.f32 1.442695, %v1119_v61 }
 0x456   : > { %v1120_v1 = vsub.f32 %v2486_v60, %v2494_v63  ;;  %1189 = vst.msk [vmem:[#allocation2 + $0x10] sm:$0xff] %vm1182_vm9, %v2494_v63  ;;  %1142 = vperm.xlu1 %2070, %v2494_v63  }
 0x457   : > { %v1113_v2 = vpop.xlane.xlu1 %1112 }
 0x458   : > { %v2504_v3 = vmax.f32 %v2496_v0, %v1113_v2  ;;  %v1126_v40 = vmul.f32 1.442695, %v1120_v1  ;;  %v1456_v1 = vld [vmem:[%s2636_s5] sm:$0xf] }
 0x459   : > { %v1509_v2 = vsel %vm1198_vm10, %v1456_v1, 0 }
 0x45a   : > { %v1121_v6 = vsub.f32 %v2496_v0, %v2504_v3  ;;  %1190 = vst.msk [vmem:[#allocation2 + $0x18] sm:$0xff] %vm1182_vm9, %v2504_v3  ;;  %1147 = vperm.xlu1 %2070, %v2504_v3  }
 0x45c   : > { %v1128_v41 = vmul.f32 1.442695, %v1121_v6 }
 0x4c9   : > { %v1133_v10 = vpop.permute.xlu0 %1132 }
 0x4ca   : > { %v1150_v11 = vsub.f32 %v2463_v30, %v1133_v10 }
 0x4cc   : > { %v1154_v12 = vmul.f32 1.442695, %v1150_v11 }
 0x4cd   : > { %v1138_v13 = vpop.permute.xlu1 %1137 }
 0x4ce   : > { %2071 = vpow2.f32 %v1154_v12  ;;  %v1151_v14 = vsub.f32 %v2466_v31, %v1138_v13  ;;  %v1338_v31 = vsel %vm1198_vm10, %v897_v27, 0  ;;  %v1380_v12 = vld [vmem:[#allocation4] sm:$0xff] }
 0x4d0   : > { %v1156_v16 = vmul.f32 1.442695, %v1151_v14 }
 0x4d1   : > { %v1143_v17 = vpop.permute.xlu1 %1142 }
 0x4d2   : > { %2073 = vpow2.f32 %v1156_v16  ;;  %v1152_v18 = vsub.f32 %v1092_v42, %v1143_v17  ;;  %v1381_v16 = vld [vmem:[#allocation4 + $0x8] sm:$0xff] }
 0x4d4   : > { %v1158_v19 = vmul.f32 1.442695, %v1152_v18 }
 0x4d5   : > { %v1148_v20 = vpop.permute.xlu1 %1147 }
 0x4d6   : > { %2075 = vpow2.f32 %v1158_v19  ;;  %v1153_v21 = vsub.f32 %v1093_v43, %v1148_v20 }
 0x4d8   : > { %v1160_v22 = vmul.f32 1.442695, %v1153_v21 }
 0x4da   : > { %2077 = vpow2.f32 %v1160_v22  ;;  %v1382_v22 = vld [vmem:[#allocation4 + $0x10] sm:$0xff] }
 0x4db   : > { %v2072_v24 = vpop.eup %2071  ;;  %2079 = vpow2.f32 %v1122_v32 }
 0x4dc   : > { %v1166_v25 = vsel %vm898_vm6, %v2072_v24, 0.0  ;;  %v1191_v4 = vpack.c.bf16 %v2072_v24, %v2072_v24  ;;  %2081 = vpow2.f32 %v1124_v37 }
 0x4dd   : > { %1167 = vadd.xlane.f32.xlu0 %v1166_v25  ;;  %2083 = vpow2.f32 %v1126_v40 }
 0x4de   : > { %1943 = vmatmul.mubr.msk.bf16.vlgmr.msra.gmra.mxu0 %vm898_vm6, %v1191_v4  ;;  %2085 = vpow2.f32 %v1128_v41 }
 0x4df   : > { %v2074_v28 = vpop.eup %2073  ;;  %1953 = vmatpush3.bf16.msra.mxu0 %v1292_v26  ;;  %1954 = vmatprep.mubr.msk.bf16.mxu0 %vm2179_vm7, %v2178_v15 }
 0x4e0   : > { %v1169_v29 = vsel %vm898_vm6, %v2074_v28, 0.0  ;;  %v1192_v30 = vpack.c.bf16 %v2074_v28, %v2074_v28  ;;  %1964 = vmatprep.subr.bf16.mxu0 %v2178_v15 }
 0x4e1   : > { %1170 = vadd.xlane.f32.xlu1 %v1169_v29  ;;  %v1383_v29 = vld [vmem:[#allocation4 + $0x18] sm:$0xff] }
 0x4e2   : > { %1949 = vmatmul.mubr.msk.bf16.vlgmr.msra.gmra.mxu1 %vm898_vm6, %v1192_v30 }
 0x4e3   : > { %v2076_v33 = vpop.eup %2075  ;;  %1959 = vmatpush3.bf16.msra.mxu1 %v1338_v31  ;;  %1960 = vmatprep.mubr.msk.bf16.mxu1 %vm2179_vm7, %v2178_v15 }
 0x4e4   : > { %v1172_v34 = vsel %vm898_vm6, %v2076_v33, 0.0  ;;  %v1193_v35 = vpack.c.bf16 %v2076_v33, %v2076_v33  ;;  %1970 = vmatprep.subr.bf16.mxu1 %v2178_v15 }
 0x4e5   : > { %1173 = vadd.xlane.f32.xlu1 %v1172_v34 }
 0x4e6   : > { %1955 = vmatmul.mubr.msk.bf16.vlgmr.msra.gmra.mxu0 %vm898_vm6, %v1193_v35 }
 0x4e7   : > { %v2078_v36 = vpop.eup %2077  ;;  %1966 = vmatprep.mubr.msk.bf16.mxu0 %vm2179_vm7, %v2178_v15  ;;  %1965 = vmatpush3.bf16.msra.mxu0 %v1463_v7 }
 0x4e8   : > { %v1175_v38 = vsel %vm898_vm6, %v2078_v36, 0.0  ;;  %v1194_v39 = vpack.c.bf16 %v2078_v36, %v2078_v36  ;;  %v2080_v42 = vpop.eup %2079  ;;  %1976 = vmatprep.subr.bf16.mxu0 %v2178_v15 }
 0x4e9   : > { %1176 = vadd.xlane.f32.xlu1 %v1175_v38  ;;  %v2082_v43 = vpop.eup %2081  ;;  %v1162_v47 = vmul.f32 %v2080_v42, %v1098_v46 }
 0x4ea   : > { %1961 = vmatmul.mubr.msk.bf16.vlgmr.msra.gmra.mxu1 %vm898_vm6, %v1194_v39  ;;  %v2084_v44 = vpop.eup %2083  ;;  %v1163_v51 = vmul.f32 %v2082_v43, %v1099_v49 }
 0x4eb   : > { %1972 = vmatprep.mubr.msk.bf16.mxu1 %vm2179_vm7, %v2178_v15  ;;  %v2086_v45 = vpop.eup %2085  ;;  %v1164_v55 = vmul.f32 %v2084_v44, %v1100_v53  ;;  %1971 = vmatpush3.bf16.msra.mxu1 %v1509_v2 }
 0x4ec   : > { %v1165_v60 = vmul.f32 %v2086_v45, %v1101_v57  ;;  %1982 = vmatprep.subr.bf16.mxu1 %v2178_v15 }
 0x4f3   : > { %1386 = vperm.xlu0 %2069, %v2080_v42  }
 0x4fa   : > { %1391 = vperm.xlu1 %2070, %v2082_v43  }
 0x4fe   : > { %1396 = vperm.xlu1 %2070, %v2084_v44  }
 0x502   : > { %1401 = vperm.xlu1 %2070, %v2086_v45   ;;  %v1821_v45 = vld [vmem:[%s2636_s5 + $0xc] sm:$0xf] }
 0x566   : > { %v1168_v48 = vpop.xlane.xlu0 %1167 }
 0x567   : > { %v1178_v50 = vadd.f32 %v1168_v48, %v1162_v47  ;;  %v1606_v48 = vsel %vm1198_vm10, %v1821_v45, 0 }
 0x569   : > { %1183 = vst.msk [vmem:[#allocation3] sm:$0xff] %vm1182_vm9, %v1178_v50 }
 0x56a   : > { %v1171_v52 = vpop.xlane.xlu1 %1170 }
 0x56b   : > { %v1179_v54 = vadd.f32 %v1171_v52, %v1163_v51  ;;  %v1819_v51 = vld [vmem:[%s2636_s5 + $0x8] sm:$0xf] }
 0x56d   : > { %1184 = vst.msk [vmem:[#allocation3 + $0x8] sm:$0xff] %vm1182_vm9, %v1179_v54  ;;  %v1557_v54 = vsel %vm1198_vm10, %v1819_v51, 0 }
 0x56e   : > { %v1174_v56 = vpop.xlane.xlu1 %1173  ;;  %v1387_v13 = vpop.permute.xlu0 %1386 }
 0x56f   : > { %v1180_v58 = vadd.f32 %v1174_v56, %v1164_v55  ;;  %v1404_v14 = vmul.f32 %v1387_v13, %v1380_v12 }
 0x570   : > { %v1416_v59 = vld [vmem:[#allocation3] sm:$0xff] }
 0x571   : > { %1185 = vst.msk [vmem:[#allocation3 + $0x10] sm:$0xff] %vm1182_vm9, %v1180_v58  ;;  %2087 = vrcp.f32 %v1416_v59 }
 0x572   : > { %v1177_v61 = vpop.xlane.xlu1 %1176 }
 0x573   : > { %v1181_v62 = vadd.f32 %v1177_v61, %v1165_v60 }
 0x574   : > { %v1417_v63 = vld [vmem:[#allocation3 + $0x8] sm:$0xff] }
 0x575   : > { %1186 = vst.msk [vmem:[#allocation3 + $0x18] sm:$0xff] %vm1182_vm9, %v1181_v62  ;;  %2089 = vrcp.f32 %v1417_v63 }
 0x576   : > { %v1392_v11 = vpop.permute.xlu1 %1391 }
 0x577   : > { %v1405_v21 = vmul.f32 %v1392_v11, %v1381_v16  ;;  %v1823_v11 = vld [vmem:[%s2637_s6] ss:$0 sm:$0xff] }
 0x578   : > { %v1418_v0 = vld [vmem:[#allocation3 + $0x10] sm:$0xff] }
 0x579   : > { %2091 = vrcp.f32 %v1418_v0 }
 0x57a   : > { %v1397_v18 = vpop.permute.xlu1 %1396 }
 0x57b   : > { %v1406_v27 = vmul.f32 %v1397_v18, %v1382_v22 }
 0x57c   : > { %v1419_v3 = vld [vmem:[#allocation3 + $0x18] sm:$0xff] }
 0x57d   : > { %2093 = vrcp.f32 %v1419_v3 }
 0x57e   : > { %v2088_v6 = vpop.eup %2087  ;;  %v1402_v28 = vpop.permute.xlu1 %1401 }
 0x57f   : > { %1430 = vperm.xlu0 %2069, %v2088_v6   ;;  %v1407_v35 = vmul.f32 %v1402_v28, %v1383_v29 }
 0x582   : > { %v2090_v8 = vpop.eup %2089 }
 0x583   : > { %1435 = vperm.xlu1 %2070, %v2090_v8  }
 0x586   : > { %v2092_v9 = vpop.eup %2091 }
 0x587   : > { %1440 = vperm.xlu1 %2070, %v2092_v9  }
 0x58a   : > { %v2094_v10 = vpop.eup %2093 }
 0x58b   : > { %1445 = vperm.xlu0 %2069, %v2094_v10  }
 0x59e   : > { %v1236_v17 = vpop.f32.mrf.mxu0 }
 0x59f   : > { %v1408_v19 = vadd.f32 %v1404_v14, %v1236_v17 }
 0x5a0   : > { %v1944_v20 = vpop.f32.mrf.mxu0 }
 0x5a1   : > { %1412 = vst.msk [vmem:[#allocation4] sm:$0xff] %vm898_vm6, %v1408_v19 }
 0x5a2   : > { %v1239_v23 = vpop.f32.mrf.mxu0  ;;  %v1282_v24 = vpop.f32.mrf.mxu1 }
 0x5a3   : > { %v1409_v25 = vadd.f32 %v1405_v21, %v1282_v24 }
 0x5a4   : > { %v1945_v4 = vpop.f32.mrf.mxu0  ;;  %v1950_v26 = vpop.f32.mrf.mxu1 }
 0x5a5   : > { %1413 = vst.msk [vmem:[#allocation4 + $0x8] sm:$0xff] %vm898_vm6, %v1409_v25 }
 0x5a6   : > { %v1285_v30 = vpop.f32.mrf.mxu1  ;;  %v1328_v31 = vpop.f32.mrf.mxu0 }
 0x5a7   : > { %v1410_v32 = vadd.f32 %v1406_v27, %v1328_v31 }
 0x5a8   : > { %v1951_v33 = vpop.f32.mrf.mxu1  ;;  %v1956_v34 = vpop.f32.mrf.mxu0  ;;  %v1424_v44 = vld [vmem:[#allocation4] sm:$0xff] }
 0x5a9   : > { %1414 = vst.msk [vmem:[#allocation4 + $0x10] sm:$0xff] %vm898_vm6, %v1410_v32 }
 0x5aa   : > { %v1331_v36 = vpop.f32.mrf.mxu0  ;;  %v1374_v37 = vpop.f32.mrf.mxu1 }
 0x5ab   : > { %v1411_v38 = vadd.f32 %v1407_v35, %v1374_v37 }
 0x5ac   : > { %v1957_v39 = vpop.f32.mrf.mxu0  ;;  %v1962_v40 = vpop.f32.mrf.mxu1  ;;  %v1425_v49 = vld [vmem:[#allocation4 + $0x8] sm:$0xff] }
 0x5ad   : > { %1415 = vst.msk [vmem:[#allocation4 + $0x18] sm:$0xff] %vm898_vm6, %v1411_v38 }
 0x5ae   : > { %v1377_v41 = vpop.f32.mrf.mxu1 }
 0x5b0   : > { %v1963_v42 = vpop.f32.mrf.mxu1  ;;  %v1426_v56 = vld [vmem:[#allocation4 + $0x10] sm:$0xff] }
 0x5b4   : > { %v1427_v59 = vld [vmem:[#allocation4 + $0x18] sm:$0xff] }
 0x5fa   : > { %v1431_v43 = vpop.permute.xlu0 %1430 }
 0x5fb   : > { %v1448_v46 = vmul.f32 %v1431_v43, %v1424_v44 }
 0x5fd   : > { %v1452_v47 = vpack.c.bf16 %v1448_v46, %v1448_v46 }
 0x5fe   : > { %v1436_v50 = vpop.permute.xlu1 %1435 }
 0x5ff   : > { %v1449_v52 = vmul.f32 %v1436_v50, %v1425_v49  ;;  %1973 = vmatmul.mubr.msk.bf16.vlgmr.msra.gmra.mxu1 %vm898_vm6, %v1452_v47 }
 0x600   : > { %1983 = vmatpush3.bf16.msra.mxu1 %v1606_v48  ;;  %1984 = vmatprep.mubr.msk.bf16.mxu1 %vm2179_vm7, %v2178_v15 }
 0x601   : > { %v1453_v53 = vpack.c.bf16 %v1449_v52, %v1449_v52 }
 0x602   : > { %v1441_v55 = vpop.permute.xlu1 %1440 }
 0x603   : > { %1967 = vmatmul.mubr.msk.bf16.vlgmr.msra.gmra.mxu0 %vm898_vm6, %v1453_v53  ;;  %v1450_v57 = vmul.f32 %v1441_v55, %v1426_v56 }
 0x604   : > { %1977 = vmatpush3.bf16.msra.mxu0 %v1557_v54  ;;  %1978 = vmatprep.mubr.msk.bf16.mxu0 %vm2179_vm7, %v2178_v15 }
 0x605   : > { %v1454_v61 = vpack.c.bf16 %v1450_v57, %v1450_v57 }
 0x606   : > { %v1446_v58 = vpop.permute.xlu0 %1445 }
 0x607   : > { %v1451_v60 = vmul.f32 %v1446_v58, %v1427_v59 }
 0x609   : > { %v1455_v62 = vpack.c.bf16 %v1451_v60, %v1451_v60 }
 0x60b   : > { %1979 = vmatmul.mubr.msk.bf16.vlgmr.msra.gmra.mxu0 %vm898_vm6, %v1454_v61  ;;  %1985 = vmatmul.mubr.msk.bf16.vlgmr.msra.gmra.mxu1 %vm898_vm6, %v1455_v62 }
 0x6bf   : > { %v1545_v63 = vpop.f32.mrf.mxu1 }
 0x6c1   : > { %v1974_v0 = vpop.f32.mrf.mxu1 }
 0x6c3   : > { %v1499_v1 = vpop.f32.mrf.mxu0  ;;  %v1548_v2 = vpop.f32.mrf.mxu1 }
 0x6c4   : > { %v1546_v15 = vadd.f32 %v1545_v63, %v1499_v1 }
 0x6c5   : > { %v1968_v3 = vpop.f32.mrf.mxu0  ;;  %v1975_v5 = vpop.f32.mrf.mxu1 }
 0x6c7   : > { %v1502_v6 = vpop.f32.mrf.mxu0 }
 0x6c9   : > { %v1969_v7 = vpop.f32.mrf.mxu0 }
 0x6cb   : > { %v1593_v8 = vpop.f32.mrf.mxu0  ;;  %v1642_v9 = vpop.f32.mrf.mxu1 }
 0x6cc   : > { %v1599_v10 = vadd.f32 %v1593_v8, %v1546_v15 }
 0x6cd   : > { %v1980_v12 = vpop.f32.mrf.mxu0  ;;  %v1986_v13 = vpop.f32.mrf.mxu1 }
 0x6ce   : > { %v1648_v14 = vadd.f32 %v1642_v9, %v1599_v10 }
 0x6cf   : > { %v1596_v16 = vpop.f32.mrf.mxu0  ;;  %v1645_v17 = vpop.f32.mrf.mxu1 }
 0x6d0   : > { %v1656_v18 = vadd.f32 %v1823_v11, %v1648_v14 }
 0x6d1   : > { %v1981_v19 = vpop.f32.mrf.mxu0  ;;  %v1987_v20 = vpop.f32.mrf.mxu1 }
 0x6d2   : > { %1658 = vst.msk [vmem:[%s306_s23] sm:$0xff] %vm1657_vm11, %v1656_v18 }
 0x6d3 PF: > { %s1667_s26 = sld [smem:[#allocation6]]  ;;  %s1675_s27 = sshll.u32 %s306_s23, 4  ;;  %s1676_s27 = int_to_ptr.vmem [resolvable:$true] %s1675_s27 }
 0x6d4   : > { %s2649_s30 = sand.u32 1, %s2155_s29   ;;  %s2095_s11 = scalar_lea.vmem %s1676_s27, 128 }
 0x6d5   : > { %s1660_s9 = scalar_lea.sflag [#allocation9], %s2649_s30  ;;  %p2096_p4 = scmp.ne.s32.totalorder %s1676_s27, %s2095_s11 }
 0x6d6   : > { %s2181_s16 = smov [#allocation8]  }
 0x6d7   : > { %p2097_p5 = pnand %p2096_p4, %p2266_p3  ;;  %s2099_s19 = sshll.u32 %s2181_s16, 4  ;;  %s2100_s19 = int_to_ptr.vmem [resolvable:$false] %s2099_s19 }
 0x6d8   : > { %s2101_s17 = scalar_lea.vmem %s2100_s19, 256  ;;  %p2102_p8 = scmp.lt.s32.totalorder %s1676_s27, %s2100_s19 }
 0x6d9   : > { %s1671_s0 = sadd.s32 %s2163_s8, %s1667_s26  ;;  %p2098_p6 = pneg %p2097_p5 }
 0x6da   : > { %s1825_s1 = sshll.u32 %s1671_s0, 7  ;;  %p2103_p9 = scmp.lt.s32.totalorder %s2101_s17, %s2095_s11 }
 0x6db   : > { %s1673_s21 = scalar_lea.hbm %s2638_s7, %s1825_s1 }
 0x6dc   : > { %p2104_p10 = por %p2103_p9, %p2102_p8 }
 0x6de   : > { %p2105_p11 = pnand %p2104_p10, %p2098_p6 }
 0x6e0   : > { %2108 = shalt.err (!%p2105_p11)
}
 0x6e1   : > { %s2109_s8 = scalar_lea.hbm %s1673_s21, 128  ;;  %s2113_s20 = scalar_lea.hbm %s2638_s7, 256 }
 0x6e2   : > { %p2110_p12 = scmp.ne.s32.totalorder %s1673_s21, %s2109_s8  ;;  %p2114_p1 = scmp.lt.s32.totalorder %s1673_s21, %s2638_s7 }
 0x6e3   : > { %p2115_p2 = scmp.lt.s32.totalorder %s2113_s20, %s2109_s8 }
 0x6e4   : > { %p2111_p13 = pnand %p2110_p12, %p2266_p3 }
 0x6e5   : > { %p2116_p4 = por %p2115_p2, %p2114_p1 }
 0x6e6   : > { %p2112_p0 = pneg %p2111_p13 }
 0x6e8   : > { %p2117_p5 = pnand %p2116_p4, %p2112_p0 }
 0x6ea   : > { %2120 = shalt.err (!%p2117_p5)
}
 0x6eb   : > { %1988 = dma.vmem_to_hbm [thread:$0]  (%p2266_p3), %s1676_s27, 128, %s1673_s21, %s1660_s9  }
 0x6ec PF: > { %p1994_p6 = scmp.ge.s32.totalorder %s2171_s10, 2  ;;  %s1687_s25 = sand.u32 1, %s2151_s28  }
 0x6ed   : > { %s1688_s26 = scalar_lea.sflag [#allocation9], %s1687_s25 }
 0x6ee   : > { %p1991_p8 = pnand %p1994_p6, %p2275_p7 }
 0x6f0   : > { %p1992_p9 = pneg %p1991_p8 }
 0x6f2   : > { %2146 = dma.done.wait (%p1992_p9), %s1688_s26, 128  }
 0x6f3   : > { %2148 = vsyncadd (%p1992_p9), %s1688_s26, 4294967168  ;;  %s22_s10 = sadd.s32 1, %s2171_s10   ;;  %s2650_s0 = sld [smem:[#allocation11_spill]] }
 0x6f4   : > { %p19_p10 = scmp.ge.s32.totalorder %s22_s10, 4   ;;  %s2651_s30 = sld [smem:[#allocation14_spill]] }
 0x6f5   : > { %s2652_s8 = sld [smem:[#allocation12_spill]]  ;;  %s2654_s28 = smov %s2155_s29 }
 0x6f6   : > { %s2653_s9 = sld [smem:[#allocation13_spill]]  ;;  %21 = sbr.rel (!%p19_p10) target bundleno = 7 (0x7), region = 96 }
 0x6f9   : > { %s2655_s29 = smov %s2650_s0 }
 0x6fb   :  { %1693 = vsyncpa [#allocation9], 1 }
 0x6fc   :  { %1695 = vsyncpa [#allocation9 + $0x1], 1 }

</bundles_post_ra>
